<compile_context>
chip_gen: v5e
topology: v5e:2x2
jax: 0.10.0
libtpu: 0.0.40
codegen_flags: <defaults>
</compile_context>

<pallas_src>
import functools

import jax
import jax.numpy as jnp
from jax.experimental import pallas as pl
from jax.experimental.pallas import tpu as pltpu

EPS = 1e-5  # PyTorch BatchNorm2d default


def _fused_double_conv_kernel(x_ref, w1_ref, w2_ref, mask_ref, bn_ref,
                              o_ref, z_ref, *, n_img, hw, m, pad, offs):
    """Fused 2x (3x3 conv -> batch-stat BN -> ReLU) in channel-major layout.

    x_ref   : (C_in,  M + 2*pad)   activation, raster (n,h,w) in lanes, zero margins
    w1_ref  : (9, C_out, C_in)     conv1 taps, tap s = ky*3 + kx
    w2_ref  : (9, C_out, C_out)    conv2 taps
    mask_ref: (9, M)               per-tap boundary validity masks (f32 0/1)
    bn_ref  : (C_out, 4)           columns = [gamma1, beta1, gamma2, beta2]
    o_ref   : (N, C_out, H*W)      output (lane-dense, H*W multiple of 128)
    z_ref   : (C_out, M + 2*pad)   VMEM scratch: stage-1 activation + zero margins
    """

    def conv_bn_relu(src_ref, w_ref, gamma, beta):
        c_out = w_ref.shape[1]
        acc = jnp.zeros((c_out, m), jnp.float32)
        # in-kernel im2col: 9 shifted lane windows, masked at image borders.
        for s, off in enumerate(offs):
            st = pad + off                               # static slice start
            view = src_ref[:, st:st + m]                 # (C_src, M) shifted window
            msk = mask_ref[s:s + 1, :]                   # (1, M) 0/1 mask
            acc = acc + jnp.dot(w_ref[s], view * msk,
                                preferred_element_type=jnp.float32)
        # BatchNorm2d training-mode stats over all M = N*H*W positions.
        inv_m = 1.0 / m
        mean = jnp.sum(acc, axis=1, keepdims=True) * inv_m        # (C_out, 1)
        d = acc - mean
        var = jnp.sum(d * d, axis=1, keepdims=True) * inv_m       # two-pass, robust
        scale = gamma * jax.lax.rsqrt(var + EPS)                  # (C_out, 1)
        shift = beta - mean * scale
        return jnp.maximum(acc * scale + shift, 0.0)              # fused FMA + ReLU

    # ---- stage 1: conv(in_ch -> out_ch) + BN + ReLU ----
    z1 = conv_bn_relu(x_ref, w1_ref, bn_ref[:, 0:1], bn_ref[:, 1:2])

    # ---- stage 2: source stays in VMEM (zero-margined scratch) ----
    z_ref[...] = jnp.zeros_like(z_ref)          # zero margins (tiny buffer)
    z_ref[:, pad:pad + m] = z1                  # lane-aligned store (pad % 128 == 0)
    z2 = conv_bn_relu(z_ref, w2_ref, bn_ref[:, 2:3], bn_ref[:, 3:4])

    # ---- lane-dense store as (N, C_out, H*W): final NCHW is a free reshape ----
    for i in range(n_img):
        o_ref[i] = z2[:, i * hw:(i + 1) * hw]


def double_conv_forward(x_nchw, params):
    """Matches double_conv(in_ch, out_ch).forward(x) for a freshly-init module."""
    N, Cin, H, W = x_nchw.shape
    Cout = params["w1"].shape[0]
    HW = H * W
    M = N * HW
    # lane margin so every 3x3 shift is an in-bounds static slice; keep the
    # stage-2 scratch write lane-aligned by rounding up to 128.
    pad = ((W + 1 + 127) // 128) * 128

    # channel-major raster layout (C, N*H*W) with zero margins — no im2col here.
    x_t = jnp.transpose(x_nchw, (1, 0, 2, 3)).reshape(Cin, M)
    x_ext = jnp.pad(x_t, ((0, 0), (pad, pad)))

    # 3x3 taps as 9 stacked (Cout, Cin) matrices, tap order s = ky*3 + kx.
    w1_taps = jnp.transpose(params["w1"], (2, 3, 0, 1)).reshape(9, Cout, Cin)
    w2_taps = jnp.transpose(params["w2"], (2, 3, 0, 1)).reshape(9, Cout, Cout)

    # lane offset and boundary-validity mask per tap (same geometry both stages).
    m_idx = jnp.arange(M, dtype=jnp.int32)
    h_idx = (m_idx // W) % H
    w_idx = m_idx % W
    offs, masks = [], []
    for ky in range(3):
        for kx in range(3):
            dy, dx = ky - 1, kx - 1
            offs.append(dy * W + dx)
            ok = ((h_idx + dy >= 0) & (h_idx + dy < H) &
                  (w_idx + dx >= 0) & (w_idx + dx < W))
            masks.append(ok)
    masks = jnp.stack(masks).astype(jnp.float32)              # (9, M)

    # Conv biases are dropped: a per-channel constant cancels exactly under
    # batch-stat BatchNorm.  Pack gamma/beta of both stages into one input.
    bn = jnp.stack([params["g1"], params["bt1"],
                    params["g2"], params["bt2"]], axis=1)     # (Cout, 4)

    kernel = functools.partial(
        _fused_double_conv_kernel,
        n_img=N, hw=HW, m=M, pad=pad, offs=tuple(offs))

    out = pl.pallas_call(
        kernel,
        out_shape=jax.ShapeDtypeStruct((N, Cout, HW), jnp.float32),
        grid=(1,),
        in_specs=[
            pl.BlockSpec((Cin, M + 2 * pad), lambda i: (0, 0)),
            pl.BlockSpec((9, Cout, Cin), lambda i: (0, 0, 0)),
            pl.BlockSpec((9, Cout, Cout), lambda i: (0, 0, 0)),
            pl.BlockSpec((9, M), lambda i: (0, 0)),
            pl.BlockSpec((Cout, 4), lambda i: (0, 0)),
        ],
        out_specs=pl.BlockSpec((N, Cout, HW), lambda i: (0, 0, 0)),
        scratch_shapes=[pltpu.VMEM((Cout, M + 2 * pad), jnp.float32)],
        compiler_params=pltpu.CompilerParams(
            dimension_semantics=("arbitrary",),
            vmem_limit_bytes=32 * 1024 * 1024,
        ),
    )(x_ext, w1_taps, w2_taps, masks, bn)

    return out.reshape(N, Cout, H, W)                         # free reshape, NCHW


# ---------------- pure-JAX reference for verification ------------------------

def reference_forward(x_nchw, params):
    def conv(x, w, b):
        y = jax.lax.conv_general_dilated(
            x, w, window_strides=(1, 1), padding="SAME",
            dimension_numbers=("NCHW", "OIHW", "NCHW"))
        return y + b[None, :, None, None]

    def bn_relu(y, g, bt):
        mean = jnp.mean(y, axis=(0, 2, 3), keepdims=True)
        var = jnp.var(y, axis=(0, 2, 3), keepdims=True)   # biased, like train-mode BN
        yn = (y - mean) / jnp.sqrt(var + EPS)
        yn = yn * g[None, :, None, None] + bt[None, :, None, None]
        return jnp.maximum(yn, 0.0)

    y1 = bn_relu(conv(x_nchw, params["w1"], params["b1"]), params["g1"], params["bt1"])
    y2 = bn_relu(conv(y1, params["w2"], params["b2"]), params["g2"], params["bt2"])
    return y2


if __name__ == "__main__":
    key = jax.random.PRNGKey(0)
    ks = jax.random.split(key, 10)

    N, in_ch, out_ch, H, W = 2, 4, 8, 16, 16

    x = jax.random.normal(ks[0], (N, in_ch, H, W), jnp.float32)

    params = {
        # Conv2d(in_ch, out_ch, 3, padding=1)
        "w1": 0.2 * jax.random.normal(ks[1], (out_ch, in_ch, 3, 3), jnp.float32),
        "b1": 0.1 * jax.random.normal(ks[2], (out_ch,), jnp.float32),
        # BatchNorm2d(out_ch)  (gamma, beta; batch stats computed in forward)
        "g1": 1.0 + 0.1 * jax.random.normal(ks[3], (out_ch,), jnp.float32),
        "bt1": 0.1 * jax.random.normal(ks[4], (out_ch,), jnp.float32),
        # Conv2d(out_ch, out_ch, 3, padding=1)
        "w2": 0.2 * jax.random.normal(ks[5], (out_ch, out_ch, 3, 3), jnp.float32),
        "b2": 0.1 * jax.random.normal(ks[6], (out_ch,), jnp.float32),
        # BatchNorm2d(out_ch)
        "g2": 1.0 + 0.1 * jax.random.normal(ks[7], (out_ch,), jnp.float32),
        "bt2": 0.1 * jax.random.normal(ks[8], (out_ch,), jnp.float32),
    }

    out = jax.jit(double_conv_forward)(x, params)
    out = jax.block_until_ready(out)

    ref = jax.block_until_ready(reference_forward(x, params))
    assert out.shape == (N, out_ch, H, W), out.shape
    assert jnp.allclose(out, ref, rtol=1e-3, atol=1e-2), float(jnp.max(jnp.abs(out - ref)))

    print("KERNEL_OK")
</pallas_src>

<mosaic_0001>
module attributes {stable_mosaic.version = 11 : i64} {
  func.func @_fused_double_conv_kernel(%arg0: i32, %arg1: memref<4x768xf32, #tpu.memory_space<vmem>>, %arg2: memref<9x8x4xf32, #tpu.memory_space<vmem>>, %arg3: memref<9x8x8xf32, #tpu.memory_space<vmem>>, %arg4: memref<9x512xf32, #tpu.memory_space<vmem>>, %arg5: memref<8x4xf32, #tpu.memory_space<vmem>>, %arg6: memref<2x8x256xf32, #tpu.memory_space<vmem>>, %arg7: memref<8x768xf32, #tpu.memory_space<vmem>>) attributes {dimension_semantics = [#tpu.dimension_semantics<arbitrary>], iteration_bounds = array<i64: 1>, scalar_prefetch = 0 : i64, scratch_operands = 1 : i64, tpu.core_type = #tpu.core_type<tc>, window_params = [{pipeline_mode = #tpu.pipeline_mode<synchronous>, transform_indices = @transform_0, window_bounds = array<i64: 4, 768>}, {pipeline_mode = #tpu.pipeline_mode<synchronous>, transform_indices = @transform_1, window_bounds = array<i64: 9, 8, 4>}, {pipeline_mode = #tpu.pipeline_mode<synchronous>, transform_indices = @transform_2, window_bounds = array<i64: 9, 8, 8>}, {pipeline_mode = #tpu.pipeline_mode<synchronous>, transform_indices = @transform_3, window_bounds = array<i64: 9, 512>}, {pipeline_mode = #tpu.pipeline_mode<synchronous>, transform_indices = @transform_4, window_bounds = array<i64: 8, 4>}, {pipeline_mode = #tpu.pipeline_mode<synchronous>, transform_indices = @transform_5, window_bounds = array<i64: 2, 8, 256>}]} {
    %c0 = arith.constant 0 : index
    %c0_0 = arith.constant 0 : index
    %0 = vector.load %arg5[%c0, %c0_0] : memref<8x4xf32, #tpu.memory_space<vmem>>, vector<8x1xf32>
    %c0_1 = arith.constant 0 : index
    %c1 = arith.constant 1 : index
    %1 = vector.load %arg5[%c0_1, %c1] : memref<8x4xf32, #tpu.memory_space<vmem>>, vector<8x1xf32>
    %cst = arith.constant 0.000000e+00 : f32
    %2 = vector.broadcast %cst : f32 to vector<8x512xf32>
    %c0_2 = arith.constant 0 : index
    %c111 = arith.constant 111 : index
    %3 = vector.load %arg1[%c0_2, %c111] : memref<4x768xf32, #tpu.memory_space<vmem>>, vector<4x512xf32>
    %c0_3 = arith.constant 0 : index
    %c0_4 = arith.constant 0 : index
    %4 = vector.load %arg4[%c0_3, %c0_4] : memref<9x512xf32, #tpu.memory_space<vmem>>, vector<1x512xf32>
    %c0_5 = arith.constant 0 : index
    %c0_6 = arith.constant 0 : index
    %c0_7 = arith.constant 0 : index
    %5 = vector.load %arg2[%c0_5, %c0_6, %c0_7] : memref<9x8x4xf32, #tpu.memory_space<vmem>>, vector<1x8x4xf32>
    %6 = vector.shape_cast %5 : vector<1x8x4xf32> to vector<8x4xf32>
    %7 = vector.broadcast %4 : vector<1x512xf32> to vector<4x512xf32>
    %8 = arith.mulf %3, %7 : vector<4x512xf32>
    %cst_8 = arith.constant dense<0.000000e+00> : vector<8x512xf32>
    %9 = tpu.matmul %6, %8, %cst_8 {dimension_numbers = #tpu.dot_dimension_numbers<[1], [0], [0], [1], [0, 0, 1, 1], [], []>} : vector<8x4xf32>, vector<4x512xf32>, vector<8x512xf32> -> vector<8x512xf32>
    %10 = arith.addf %2, %9 : vector<8x512xf32>
    %c0_9 = arith.constant 0 : index
    %c112 = arith.constant 112 : index
    %11 = vector.load %arg1[%c0_9, %c112] : memref<4x768xf32, #tpu.memory_space<vmem>>, vector<4x512xf32>
    %c1_10 = arith.constant 1 : index
    %c0_11 = arith.constant 0 : index
    %12 = vector.load %arg4[%c1_10, %c0_11] : memref<9x512xf32, #tpu.memory_space<vmem>>, vector<1x512xf32>
    %c1_12 = arith.constant 1 : index
    %c0_13 = arith.constant 0 : index
    %c0_14 = arith.constant 0 : index
    %13 = vector.load %arg2[%c1_12, %c0_13, %c0_14] : memref<9x8x4xf32, #tpu.memory_space<vmem>>, vector<1x8x4xf32>
    %14 = vector.shape_cast %13 : vector<1x8x4xf32> to vector<8x4xf32>
    %15 = vector.broadcast %12 : vector<1x512xf32> to vector<4x512xf32>
    %16 = arith.mulf %11, %15 : vector<4x512xf32>
    %cst_15 = arith.constant dense<0.000000e+00> : vector<8x512xf32>
    %17 = tpu.matmul %14, %16, %cst_15 {dimension_numbers = #tpu.dot_dimension_numbers<[1], [0], [0], [1], [0, 0, 1, 1], [], []>} : vector<8x4xf32>, vector<4x512xf32>, vector<8x512xf32> -> vector<8x512xf32>
    %18 = arith.addf %10, %17 : vector<8x512xf32>
    %c0_16 = arith.constant 0 : index
    %c113 = arith.constant 113 : index
    %19 = vector.load %arg1[%c0_16, %c113] : memref<4x768xf32, #tpu.memory_space<vmem>>, vector<4x512xf32>
    %c2 = arith.constant 2 : index
    %c0_17 = arith.constant 0 : index
    %20 = vector.load %arg4[%c2, %c0_17] : memref<9x512xf32, #tpu.memory_space<vmem>>, vector<1x512xf32>
    %c2_18 = arith.constant 2 : index
    %c0_19 = arith.constant 0 : index
    %c0_20 = arith.constant 0 : index
    %21 = vector.load %arg2[%c2_18, %c0_19, %c0_20] : memref<9x8x4xf32, #tpu.memory_space<vmem>>, vector<1x8x4xf32>
    %22 = vector.shape_cast %21 : vector<1x8x4xf32> to vector<8x4xf32>
    %23 = vector.broadcast %20 : vector<1x512xf32> to vector<4x512xf32>
    %24 = arith.mulf %19, %23 : vector<4x512xf32>
    %cst_21 = arith.constant dense<0.000000e+00> : vector<8x512xf32>
    %25 = tpu.matmul %22, %24, %cst_21 {dimension_numbers = #tpu.dot_dimension_numbers<[1], [0], [0], [1], [0, 0, 1, 1], [], []>} : vector<8x4xf32>, vector<4x512xf32>, vector<8x512xf32> -> vector<8x512xf32>
    %26 = arith.addf %18, %25 : vector<8x512xf32>
    %c0_22 = arith.constant 0 : index
    %c127 = arith.constant 127 : index
    %27 = vector.load %arg1[%c0_22, %c127] : memref<4x768xf32, #tpu.memory_space<vmem>>, vector<4x512xf32>
    %c3 = arith.constant 3 : index
    %c0_23 = arith.constant 0 : index
    %28 = vector.load %arg4[%c3, %c0_23] : memref<9x512xf32, #tpu.memory_space<vmem>>, vector<1x512xf32>
    %c3_24 = arith.constant 3 : index
    %c0_25 = arith.constant 0 : index
    %c0_26 = arith.constant 0 : index
    %29 = vector.load %arg2[%c3_24, %c0_25, %c0_26] : memref<9x8x4xf32, #tpu.memory_space<vmem>>, vector<1x8x4xf32>
    %30 = vector.shape_cast %29 : vector<1x8x4xf32> to vector<8x4xf32>
    %31 = vector.broadcast %28 : vector<1x512xf32> to vector<4x512xf32>
    %32 = arith.mulf %27, %31 : vector<4x512xf32>
    %cst_27 = arith.constant dense<0.000000e+00> : vector<8x512xf32>
    %33 = tpu.matmul %30, %32, %cst_27 {dimension_numbers = #tpu.dot_dimension_numbers<[1], [0], [0], [1], [0, 0, 1, 1], [], []>} : vector<8x4xf32>, vector<4x512xf32>, vector<8x512xf32> -> vector<8x512xf32>
    %34 = arith.addf %26, %33 : vector<8x512xf32>
    %c0_28 = arith.constant 0 : index
    %c128 = arith.constant 128 : index
    %35 = vector.load %arg1[%c0_28, %c128] : memref<4x768xf32, #tpu.memory_space<vmem>>, vector<4x512xf32>
    %c4 = arith.constant 4 : index
    %c0_29 = arith.constant 0 : index
    %36 = vector.load %arg4[%c4, %c0_29] : memref<9x512xf32, #tpu.memory_space<vmem>>, vector<1x512xf32>
    %c4_30 = arith.constant 4 : index
    %c0_31 = arith.constant 0 : index
    %c0_32 = arith.constant 0 : index
    %37 = vector.load %arg2[%c4_30, %c0_31, %c0_32] : memref<9x8x4xf32, #tpu.memory_space<vmem>>, vector<1x8x4xf32>
    %38 = vector.shape_cast %37 : vector<1x8x4xf32> to vector<8x4xf32>
    %39 = vector.broadcast %36 : vector<1x512xf32> to vector<4x512xf32>
    %40 = arith.mulf %35, %39 : vector<4x512xf32>
    %cst_33 = arith.constant dense<0.000000e+00> : vector<8x512xf32>
    %41 = tpu.matmul %38, %40, %cst_33 {dimension_numbers = #tpu.dot_dimension_numbers<[1], [0], [0], [1], [0, 0, 1, 1], [], []>} : vector<8x4xf32>, vector<4x512xf32>, vector<8x512xf32> -> vector<8x512xf32>
    %42 = arith.addf %34, %41 : vector<8x512xf32>
    %c0_34 = arith.constant 0 : index
    %c129 = arith.constant 129 : index
    %43 = vector.load %arg1[%c0_34, %c129] : memref<4x768xf32, #tpu.memory_space<vmem>>, vector<4x512xf32>
    %c5 = arith.constant 5 : index
    %c0_35 = arith.constant 0 : index
    %44 = vector.load %arg4[%c5, %c0_35] : memref<9x512xf32, #tpu.memory_space<vmem>>, vector<1x512xf32>
    %c5_36 = arith.constant 5 : index
    %c0_37 = arith.constant 0 : index
    %c0_38 = arith.constant 0 : index
    %45 = vector.load %arg2[%c5_36, %c0_37, %c0_38] : memref<9x8x4xf32, #tpu.memory_space<vmem>>, vector<1x8x4xf32>
    %46 = vector.shape_cast %45 : vector<1x8x4xf32> to vector<8x4xf32>
    %47 = vector.broadcast %44 : vector<1x512xf32> to vector<4x512xf32>
    %48 = arith.mulf %43, %47 : vector<4x512xf32>
    %cst_39 = arith.constant dense<0.000000e+00> : vector<8x512xf32>
    %49 = tpu.matmul %46, %48, %cst_39 {dimension_numbers = #tpu.dot_dimension_numbers<[1], [0], [0], [1], [0, 0, 1, 1], [], []>} : vector<8x4xf32>, vector<4x512xf32>, vector<8x512xf32> -> vector<8x512xf32>
    %50 = arith.addf %42, %49 : vector<8x512xf32>
    %c0_40 = arith.constant 0 : index
    %c143 = arith.constant 143 : index
    %51 = vector.load %arg1[%c0_40, %c143] : memref<4x768xf32, #tpu.memory_space<vmem>>, vector<4x512xf32>
    %c6 = arith.constant 6 : index
    %c0_41 = arith.constant 0 : index
    %52 = vector.load %arg4[%c6, %c0_41] : memref<9x512xf32, #tpu.memory_space<vmem>>, vector<1x512xf32>
    %c6_42 = arith.constant 6 : index
    %c0_43 = arith.constant 0 : index
    %c0_44 = arith.constant 0 : index
    %53 = vector.load %arg2[%c6_42, %c0_43, %c0_44] : memref<9x8x4xf32, #tpu.memory_space<vmem>>, vector<1x8x4xf32>
    %54 = vector.shape_cast %53 : vector<1x8x4xf32> to vector<8x4xf32>
    %55 = vector.broadcast %52 : vector<1x512xf32> to vector<4x512xf32>
    %56 = arith.mulf %51, %55 : vector<4x512xf32>
    %cst_45 = arith.constant dense<0.000000e+00> : vector<8x512xf32>
    %57 = tpu.matmul %54, %56, %cst_45 {dimension_numbers = #tpu.dot_dimension_numbers<[1], [0], [0], [1], [0, 0, 1, 1], [], []>} : vector<8x4xf32>, vector<4x512xf32>, vector<8x512xf32> -> vector<8x512xf32>
    %58 = arith.addf %50, %57 : vector<8x512xf32>
    %c0_46 = arith.constant 0 : index
    %c144 = arith.constant 144 : index
    %59 = vector.load %arg1[%c0_46, %c144] : memref<4x768xf32, #tpu.memory_space<vmem>>, vector<4x512xf32>
    %c7 = arith.constant 7 : index
    %c0_47 = arith.constant 0 : index
    %60 = vector.load %arg4[%c7, %c0_47] : memref<9x512xf32, #tpu.memory_space<vmem>>, vector<1x512xf32>
    %c7_48 = arith.constant 7 : index
    %c0_49 = arith.constant 0 : index
    %c0_50 = arith.constant 0 : index
    %61 = vector.load %arg2[%c7_48, %c0_49, %c0_50] : memref<9x8x4xf32, #tpu.memory_space<vmem>>, vector<1x8x4xf32>
    %62 = vector.shape_cast %61 : vector<1x8x4xf32> to vector<8x4xf32>
    %63 = vector.broadcast %60 : vector<1x512xf32> to vector<4x512xf32>
    %64 = arith.mulf %59, %63 : vector<4x512xf32>
    %cst_51 = arith.constant dense<0.000000e+00> : vector<8x512xf32>
    %65 = tpu.matmul %62, %64, %cst_51 {dimension_numbers = #tpu.dot_dimension_numbers<[1], [0], [0], [1], [0, 0, 1, 1], [], []>} : vector<8x4xf32>, vector<4x512xf32>, vector<8x512xf32> -> vector<8x512xf32>
    %66 = arith.addf %58, %65 : vector<8x512xf32>
    %c0_52 = arith.constant 0 : index
    %c145 = arith.constant 145 : index
    %67 = vector.load %arg1[%c0_52, %c145] : memref<4x768xf32, #tpu.memory_space<vmem>>, vector<4x512xf32>
    %c8 = arith.constant 8 : index
    %c0_53 = arith.constant 0 : index
    %68 = vector.load %arg4[%c8, %c0_53] : memref<9x512xf32, #tpu.memory_space<vmem>>, vector<1x512xf32>
    %c8_54 = arith.constant 8 : index
    %c0_55 = arith.constant 0 : index
    %c0_56 = arith.constant 0 : index
    %69 = vector.load %arg2[%c8_54, %c0_55, %c0_56] : memref<9x8x4xf32, #tpu.memory_space<vmem>>, vector<1x8x4xf32>
    %70 = vector.shape_cast %69 : vector<1x8x4xf32> to vector<8x4xf32>
    %71 = vector.broadcast %68 : vector<1x512xf32> to vector<4x512xf32>
    %72 = arith.mulf %67, %71 : vector<4x512xf32>
    %cst_57 = arith.constant dense<0.000000e+00> : vector<8x512xf32>
    %73 = tpu.matmul %70, %72, %cst_57 {dimension_numbers = #tpu.dot_dimension_numbers<[1], [0], [0], [1], [0, 0, 1, 1], [], []>} : vector<8x4xf32>, vector<4x512xf32>, vector<8x512xf32> -> vector<8x512xf32>
    %74 = arith.addf %66, %73 : vector<8x512xf32>
    %cst_58 = arith.constant dense<0.000000e+00> : vector<8xf32>
    %75 = vector.multi_reduction <add>, %74, %cst_58 [1] : vector<8x512xf32> to vector<8xf32>
    %76 = vector.shape_cast %75 : vector<8xf32> to vector<8x1xf32>
    %cst_59 = arith.constant 0.001953125 : f32
    %77 = vector.broadcast %cst_59 : f32 to vector<8x1xf32>
    %78 = arith.mulf %76, %77 : vector<8x1xf32>
    %79 = vector.broadcast %78 : vector<8x1xf32> to vector<8x512xf32>
    %80 = arith.subf %74, %79 : vector<8x512xf32>
    %81 = arith.mulf %80, %80 : vector<8x512xf32>
    %cst_60 = arith.constant dense<0.000000e+00> : vector<8xf32>
    %82 = vector.multi_reduction <add>, %81, %cst_60 [1] : vector<8x512xf32> to vector<8xf32>
    %83 = vector.shape_cast %82 : vector<8xf32> to vector<8x1xf32>
    %cst_61 = arith.constant 0.001953125 : f32
    %84 = vector.broadcast %cst_61 : f32 to vector<8x1xf32>
    %85 = arith.mulf %83, %84 : vector<8x1xf32>
    %cst_62 = arith.constant 9.99999974E-6 : f32
    %86 = vector.broadcast %cst_62 : f32 to vector<8x1xf32>
    %87 = arith.addf %85, %86 : vector<8x1xf32>
    %88 = math.rsqrt %87 : vector<8x1xf32>
    %89 = arith.mulf %0, %88 : vector<8x1xf32>
    %90 = arith.mulf %78, %89 : vector<8x1xf32>
    %91 = arith.subf %1, %90 : vector<8x1xf32>
    %92 = vector.broadcast %89 : vector<8x1xf32> to vector<8x512xf32>
    %93 = arith.mulf %74, %92 : vector<8x512xf32>
    %94 = vector.broadcast %91 : vector<8x1xf32> to vector<8x512xf32>
    %95 = arith.addf %93, %94 : vector<8x512xf32>
    %cst_63 = arith.constant 0.000000e+00 : f32
    %96 = vector.broadcast %cst_63 : f32 to vector<8x512xf32>
    %97 = arith.maximumf %95, %96 : vector<8x512xf32>
    %cst_64 = arith.constant 0.000000e+00 : f32
    %98 = vector.broadcast %cst_64 : f32 to vector<8x768xf32>
    %c0_65 = arith.constant 0 : index
    %c0_66 = arith.constant 0 : index
    %99 = vector.load %arg7[%c0_65, %c0_66] : memref<8x768xf32, #tpu.memory_space<vmem>>, vector<8x768xf32>
    tpu.vector_store %arg7[%c0_65, %c0_66], %98 {strides = array<i32>} : memref<8x768xf32, #tpu.memory_space<vmem>>, vector<8x768xf32>,
    %c0_67 = arith.constant 0 : index
    %c128_68 = arith.constant 128 : index
    %100 = vector.load %arg7[%c0_67, %c128_68] : memref<8x768xf32, #tpu.memory_space<vmem>>, vector<8x512xf32>
    tpu.vector_store %arg7[%c0_67, %c128_68], %97 {strides = array<i32>} : memref<8x768xf32, #tpu.memory_space<vmem>>, vector<8x512xf32>,
    %c0_69 = arith.constant 0 : index
    %c2_70 = arith.constant 2 : index
    %101 = vector.load %arg5[%c0_69, %c2_70] : memref<8x4xf32, #tpu.memory_space<vmem>>, vector<8x1xf32>
    %c0_71 = arith.constant 0 : index
    %c3_72 = arith.constant 3 : index
    %102 = vector.load %arg5[%c0_71, %c3_72] : memref<8x4xf32, #tpu.memory_space<vmem>>, vector<8x1xf32>
    %cst_73 = arith.constant 0.000000e+00 : f32
    %103 = vector.broadcast %cst_73 : f32 to vector<8x512xf32>
    %c0_74 = arith.constant 0 : index
    %c111_75 = arith.constant 111 : index
    %104 = vector.load %arg7[%c0_74, %c111_75] : memref<8x768xf32, #tpu.memory_space<vmem>>, vector<8x512xf32>
    %c0_76 = arith.constant 0 : index
    %c0_77 = arith.constant 0 : index
    %105 = vector.load %arg4[%c0_76, %c0_77] : memref<9x512xf32, #tpu.memory_space<vmem>>, vector<1x512xf32>
    %c0_78 = arith.constant 0 : index
    %c0_79 = arith.constant 0 : index
    %c0_80 = arith.constant 0 : index
    %106 = vector.load %arg3[%c0_78, %c0_79, %c0_80] : memref<9x8x8xf32, #tpu.memory_space<vmem>>, vector<1x8x8xf32>
    %107 = vector.shape_cast %106 : vector<1x8x8xf32> to vector<8x8xf32>
    %108 = vector.broadcast %105 : vector<1x512xf32> to vector<8x512xf32>
    %109 = arith.mulf %104, %108 : vector<8x512xf32>
    %cst_81 = arith.constant dense<0.000000e+00> : vector<8x512xf32>
    %110 = tpu.matmul %107, %109, %cst_81 {dimension_numbers = #tpu.dot_dimension_numbers<[1], [0], [0], [1], [0, 0, 1, 1], [], []>} : vector<8x8xf32>, vector<8x512xf32>, vector<8x512xf32> -> vector<8x512xf32>
    %111 = arith.addf %103, %110 : vector<8x512xf32>
    %c0_82 = arith.constant 0 : index
    %c112_83 = arith.constant 112 : index
    %112 = vector.load %arg7[%c0_82, %c112_83] : memref<8x768xf32, #tpu.memory_space<vmem>>, vector<8x512xf32>
    %c1_84 = arith.constant 1 : index
    %c0_85 = arith.constant 0 : index
    %113 = vector.load %arg4[%c1_84, %c0_85] : memref<9x512xf32, #tpu.memory_space<vmem>>, vector<1x512xf32>
    %c1_86 = arith.constant 1 : index
    %c0_87 = arith.constant 0 : index
    %c0_88 = arith.constant 0 : index
    %114 = vector.load %arg3[%c1_86, %c0_87, %c0_88] : memref<9x8x8xf32, #tpu.memory_space<vmem>>, vector<1x8x8xf32>
    %115 = vector.shape_cast %114 : vector<1x8x8xf32> to vector<8x8xf32>
    %116 = vector.broadcast %113 : vector<1x512xf32> to vector<8x512xf32>
    %117 = arith.mulf %112, %116 : vector<8x512xf32>
    %cst_89 = arith.constant dense<0.000000e+00> : vector<8x512xf32>
    %118 = tpu.matmul %115, %117, %cst_89 {dimension_numbers = #tpu.dot_dimension_numbers<[1], [0], [0], [1], [0, 0, 1, 1], [], []>} : vector<8x8xf32>, vector<8x512xf32>, vector<8x512xf32> -> vector<8x512xf32>
    %119 = arith.addf %111, %118 : vector<8x512xf32>
    %c0_90 = arith.constant 0 : index
    %c113_91 = arith.constant 113 : index
    %120 = vector.load %arg7[%c0_90, %c113_91] : memref<8x768xf32, #tpu.memory_space<vmem>>, vector<8x512xf32>
    %c2_92 = arith.constant 2 : index
    %c0_93 = arith.constant 0 : index
    %121 = vector.load %arg4[%c2_92, %c0_93] : memref<9x512xf32, #tpu.memory_space<vmem>>, vector<1x512xf32>
    %c2_94 = arith.constant 2 : index
    %c0_95 = arith.constant 0 : index
    %c0_96 = arith.constant 0 : index
    %122 = vector.load %arg3[%c2_94, %c0_95, %c0_96] : memref<9x8x8xf32, #tpu.memory_space<vmem>>, vector<1x8x8xf32>
    %123 = vector.shape_cast %122 : vector<1x8x8xf32> to vector<8x8xf32>
    %124 = vector.broadcast %121 : vector<1x512xf32> to vector<8x512xf32>
    %125 = arith.mulf %120, %124 : vector<8x512xf32>
    %cst_97 = arith.constant dense<0.000000e+00> : vector<8x512xf32>
    %126 = tpu.matmul %123, %125, %cst_97 {dimension_numbers = #tpu.dot_dimension_numbers<[1], [0], [0], [1], [0, 0, 1, 1], [], []>} : vector<8x8xf32>, vector<8x512xf32>, vector<8x512xf32> -> vector<8x512xf32>
    %127 = arith.addf %119, %126 : vector<8x512xf32>
    %c0_98 = arith.constant 0 : index
    %c127_99 = arith.constant 127 : index
    %128 = vector.load %arg7[%c0_98, %c127_99] : memref<8x768xf32, #tpu.memory_space<vmem>>, vector<8x512xf32>
    %c3_100 = arith.constant 3 : index
    %c0_101 = arith.constant 0 : index
    %129 = vector.load %arg4[%c3_100, %c0_101] : memref<9x512xf32, #tpu.memory_space<vmem>>, vector<1x512xf32>
    %c3_102 = arith.constant 3 : index
    %c0_103 = arith.constant 0 : index
    %c0_104 = arith.constant 0 : index
    %130 = vector.load %arg3[%c3_102, %c0_103, %c0_104] : memref<9x8x8xf32, #tpu.memory_space<vmem>>, vector<1x8x8xf32>
    %131 = vector.shape_cast %130 : vector<1x8x8xf32> to vector<8x8xf32>
    %132 = vector.broadcast %129 : vector<1x512xf32> to vector<8x512xf32>
    %133 = arith.mulf %128, %132 : vector<8x512xf32>
    %cst_105 = arith.constant dense<0.000000e+00> : vector<8x512xf32>
    %134 = tpu.matmul %131, %133, %cst_105 {dimension_numbers = #tpu.dot_dimension_numbers<[1], [0], [0], [1], [0, 0, 1, 1], [], []>} : vector<8x8xf32>, vector<8x512xf32>, vector<8x512xf32> -> vector<8x512xf32>
    %135 = arith.addf %127, %134 : vector<8x512xf32>
    %c0_106 = arith.constant 0 : index
    %c128_107 = arith.constant 128 : index
    %136 = vector.load %arg7[%c0_106, %c128_107] : memref<8x768xf32, #tpu.memory_space<vmem>>, vector<8x512xf32>
    %c4_108 = arith.constant 4 : index
    %c0_109 = arith.constant 0 : index
    %137 = vector.load %arg4[%c4_108, %c0_109] : memref<9x512xf32, #tpu.memory_space<vmem>>, vector<1x512xf32>
    %c4_110 = arith.constant 4 : index
    %c0_111 = arith.constant 0 : index
    %c0_112 = arith.constant 0 : index
    %138 = vector.load %arg3[%c4_110, %c0_111, %c0_112] : memref<9x8x8xf32, #tpu.memory_space<vmem>>, vector<1x8x8xf32>
    %139 = vector.shape_cast %138 : vector<1x8x8xf32> to vector<8x8xf32>
    %140 = vector.broadcast %137 : vector<1x512xf32> to vector<8x512xf32>
    %141 = arith.mulf %136, %140 : vector<8x512xf32>
    %cst_113 = arith.constant dense<0.000000e+00> : vector<8x512xf32>
    %142 = tpu.matmul %139, %141, %cst_113 {dimension_numbers = #tpu.dot_dimension_numbers<[1], [0], [0], [1], [0, 0, 1, 1], [], []>} : vector<8x8xf32>, vector<8x512xf32>, vector<8x512xf32> -> vector<8x512xf32>
    %143 = arith.addf %135, %142 : vector<8x512xf32>
    %c0_114 = arith.constant 0 : index
    %c129_115 = arith.constant 129 : index
    %144 = vector.load %arg7[%c0_114, %c129_115] : memref<8x768xf32, #tpu.memory_space<vmem>>, vector<8x512xf32>
    %c5_116 = arith.constant 5 : index
    %c0_117 = arith.constant 0 : index
    %145 = vector.load %arg4[%c5_116, %c0_117] : memref<9x512xf32, #tpu.memory_space<vmem>>, vector<1x512xf32>
    %c5_118 = arith.constant 5 : index
    %c0_119 = arith.constant 0 : index
    %c0_120 = arith.constant 0 : index
    %146 = vector.load %arg3[%c5_118, %c0_119, %c0_120] : memref<9x8x8xf32, #tpu.memory_space<vmem>>, vector<1x8x8xf32>
    %147 = vector.shape_cast %146 : vector<1x8x8xf32> to vector<8x8xf32>
    %148 = vector.broadcast %145 : vector<1x512xf32> to vector<8x512xf32>
    %149 = arith.mulf %144, %148 : vector<8x512xf32>
    %cst_121 = arith.constant dense<0.000000e+00> : vector<8x512xf32>
    %150 = tpu.matmul %147, %149, %cst_121 {dimension_numbers = #tpu.dot_dimension_numbers<[1], [0], [0], [1], [0, 0, 1, 1], [], []>} : vector<8x8xf32>, vector<8x512xf32>, vector<8x512xf32> -> vector<8x512xf32>
    %151 = arith.addf %143, %150 : vector<8x512xf32>
    %c0_122 = arith.constant 0 : index
    %c143_123 = arith.constant 143 : index
    %152 = vector.load %arg7[%c0_122, %c143_123] : memref<8x768xf32, #tpu.memory_space<vmem>>, vector<8x512xf32>
    %c6_124 = arith.constant 6 : index
    %c0_125 = arith.constant 0 : index
    %153 = vector.load %arg4[%c6_124, %c0_125] : memref<9x512xf32, #tpu.memory_space<vmem>>, vector<1x512xf32>
    %c6_126 = arith.constant 6 : index
    %c0_127 = arith.constant 0 : index
    %c0_128 = arith.constant 0 : index
    %154 = vector.load %arg3[%c6_126, %c0_127, %c0_128] : memref<9x8x8xf32, #tpu.memory_space<vmem>>, vector<1x8x8xf32>
    %155 = vector.shape_cast %154 : vector<1x8x8xf32> to vector<8x8xf32>
    %156 = vector.broadcast %153 : vector<1x512xf32> to vector<8x512xf32>
    %157 = arith.mulf %152, %156 : vector<8x512xf32>
    %cst_129 = arith.constant dense<0.000000e+00> : vector<8x512xf32>
    %158 = tpu.matmul %155, %157, %cst_129 {dimension_numbers = #tpu.dot_dimension_numbers<[1], [0], [0], [1], [0, 0, 1, 1], [], []>} : vector<8x8xf32>, vector<8x512xf32>, vector<8x512xf32> -> vector<8x512xf32>
    %159 = arith.addf %151, %158 : vector<8x512xf32>
    %c0_130 = arith.constant 0 : index
    %c144_131 = arith.constant 144 : index
    %160 = vector.load %arg7[%c0_130, %c144_131] : memref<8x768xf32, #tpu.memory_space<vmem>>, vector<8x512xf32>
    %c7_132 = arith.constant 7 : index
    %c0_133 = arith.constant 0 : index
    %161 = vector.load %arg4[%c7_132, %c0_133] : memref<9x512xf32, #tpu.memory_space<vmem>>, vector<1x512xf32>
    %c7_134 = arith.constant 7 : index
    %c0_135 = arith.constant 0 : index
    %c0_136 = arith.constant 0 : index
    %162 = vector.load %arg3[%c7_134, %c0_135, %c0_136] : memref<9x8x8xf32, #tpu.memory_space<vmem>>, vector<1x8x8xf32>
    %163 = vector.shape_cast %162 : vector<1x8x8xf32> to vector<8x8xf32>
    %164 = vector.broadcast %161 : vector<1x512xf32> to vector<8x512xf32>
    %165 = arith.mulf %160, %164 : vector<8x512xf32>
    %cst_137 = arith.constant dense<0.000000e+00> : vector<8x512xf32>
    %166 = tpu.matmul %163, %165, %cst_137 {dimension_numbers = #tpu.dot_dimension_numbers<[1], [0], [0], [1], [0, 0, 1, 1], [], []>} : vector<8x8xf32>, vector<8x512xf32>, vector<8x512xf32> -> vector<8x512xf32>
    %167 = arith.addf %159, %166 : vector<8x512xf32>
    %c0_138 = arith.constant 0 : index
    %c145_139 = arith.constant 145 : index
    %168 = vector.load %arg7[%c0_138, %c145_139] : memref<8x768xf32, #tpu.memory_space<vmem>>, vector<8x512xf32>
    %c8_140 = arith.constant 8 : index
    %c0_141 = arith.constant 0 : index
    %169 = vector.load %arg4[%c8_140, %c0_141] : memref<9x512xf32, #tpu.memory_space<vmem>>, vector<1x512xf32>
    %c8_142 = arith.constant 8 : index
    %c0_143 = arith.constant 0 : index
    %c0_144 = arith.constant 0 : index
    %170 = vector.load %arg3[%c8_142, %c0_143, %c0_144] : memref<9x8x8xf32, #tpu.memory_space<vmem>>, vector<1x8x8xf32>
    %171 = vector.shape_cast %170 : vector<1x8x8xf32> to vector<8x8xf32>
    %172 = vector.broadcast %169 : vector<1x512xf32> to vector<8x512xf32>
    %173 = arith.mulf %168, %172 : vector<8x512xf32>
    %cst_145 = arith.constant dense<0.000000e+00> : vector<8x512xf32>
    %174 = tpu.matmul %171, %173, %cst_145 {dimension_numbers = #tpu.dot_dimension_numbers<[1], [0], [0], [1], [0, 0, 1, 1], [], []>} : vector<8x8xf32>, vector<8x512xf32>, vector<8x512xf32> -> vector<8x512xf32>
    %175 = arith.addf %167, %174 : vector<8x512xf32>
    %cst_146 = arith.constant dense<0.000000e+00> : vector<8xf32>
    %176 = vector.multi_reduction <add>, %175, %cst_146 [1] : vector<8x512xf32> to vector<8xf32>
    %177 = vector.shape_cast %176 : vector<8xf32> to vector<8x1xf32>
    %cst_147 = arith.constant 0.001953125 : f32
    %178 = vector.broadcast %cst_147 : f32 to vector<8x1xf32>
    %179 = arith.mulf %177, %178 : vector<8x1xf32>
    %180 = vector.broadcast %179 : vector<8x1xf32> to vector<8x512xf32>
    %181 = arith.subf %175, %180 : vector<8x512xf32>
    %182 = arith.mulf %181, %181 : vector<8x512xf32>
    %cst_148 = arith.constant dense<0.000000e+00> : vector<8xf32>
    %183 = vector.multi_reduction <add>, %182, %cst_148 [1] : vector<8x512xf32> to vector<8xf32>
    %184 = vector.shape_cast %183 : vector<8xf32> to vector<8x1xf32>
    %cst_149 = arith.constant 0.001953125 : f32
    %185 = vector.broadcast %cst_149 : f32 to vector<8x1xf32>
    %186 = arith.mulf %184, %185 : vector<8x1xf32>
    %cst_150 = arith.constant 9.99999974E-6 : f32
    %187 = vector.broadcast %cst_150 : f32 to vector<8x1xf32>
    %188 = arith.addf %186, %187 : vector<8x1xf32>
    %189 = math.rsqrt %188 : vector<8x1xf32>
    %190 = arith.mulf %101, %189 : vector<8x1xf32>
    %191 = arith.mulf %179, %190 : vector<8x1xf32>
    %192 = arith.subf %102, %191 : vector<8x1xf32>
    %193 = vector.broadcast %190 : vector<8x1xf32> to vector<8x512xf32>
    %194 = arith.mulf %175, %193 : vector<8x512xf32>
    %195 = vector.broadcast %192 : vector<8x1xf32> to vector<8x512xf32>
    %196 = arith.addf %194, %195 : vector<8x512xf32>
    %cst_151 = arith.constant 0.000000e+00 : f32
    %197 = vector.broadcast %cst_151 : f32 to vector<8x512xf32>
    %198 = arith.maximumf %196, %197 : vector<8x512xf32>
    %199 = vector.extract_strided_slice %198 {offsets = [0, 0], sizes = [8, 256], strides = [1, 1]} : vector<8x512xf32> to vector<8x256xf32>
    %c0_152 = arith.constant 0 : index
    %c0_153 = arith.constant 0 : index
    %c0_154 = arith.constant 0 : index
    %200 = vector.load %arg6[%c0_152, %c0_153, %c0_154] : memref<2x8x256xf32, #tpu.memory_space<vmem>>, vector<1x8x256xf32>
    %201 = vector.shape_cast %200 : vector<1x8x256xf32> to vector<8x256xf32>
    %202 = vector.shape_cast %199 : vector<8x256xf32> to vector<1x8x256xf32>
    tpu.vector_store %arg6[%c0_152, %c0_153, %c0_154], %202 {strides = array<i32>} : memref<2x8x256xf32, #tpu.memory_space<vmem>>, vector<1x8x256xf32>,
    %203 = vector.extract_strided_slice %198 {offsets = [0, 256], sizes = [8, 256], strides = [1, 1]} : vector<8x512xf32> to vector<8x256xf32>
    %c1_155 = arith.constant 1 : index
    %c0_156 = arith.constant 0 : index
    %c0_157 = arith.constant 0 : index
    %204 = vector.load %arg6[%c1_155, %c0_156, %c0_157] : memref<2x8x256xf32, #tpu.memory_space<vmem>>, vector<1x8x256xf32>
    %205 = vector.shape_cast %204 : vector<1x8x256xf32> to vector<8x256xf32>
    %206 = vector.shape_cast %203 : vector<8x256xf32> to vector<1x8x256xf32>
    tpu.vector_store %arg6[%c1_155, %c0_156, %c0_157], %206 {strides = array<i32>} : memref<2x8x256xf32, #tpu.memory_space<vmem>>, vector<1x8x256xf32>,
    return
  }
  func.func @transform_0(%arg0: i32) -> (i32, i32) {
    %c0_i32 = arith.constant 0 : i32
    %c0_i32_0 = arith.constant 0 : i32
    %c0_i32_1 = arith.constant 0 : i32
    return %c0_i32, %c0_i32_0 : i32, i32
  }
  func.func @transform_1(%arg0: i32) -> (i32, i32, i32) {
    %c0_i32 = arith.constant 0 : i32
    %c0_i32_0 = arith.constant 0 : i32
    %c0_i32_1 = arith.constant 0 : i32
    %c0_i32_2 = arith.constant 0 : i32
    return %c0_i32, %c0_i32_0, %c0_i32_1 : i32, i32, i32
  }
  func.func @transform_2(%arg0: i32) -> (i32, i32, i32) {
    %c0_i32 = arith.constant 0 : i32
    %c0_i32_0 = arith.constant 0 : i32
    %c0_i32_1 = arith.constant 0 : i32
    %c0_i32_2 = arith.constant 0 : i32
    return %c0_i32, %c0_i32_0, %c0_i32_1 : i32, i32, i32
  }
  func.func @transform_3(%arg0: i32) -> (i32, i32) {
    %c0_i32 = arith.constant 0 : i32
    %c0_i32_0 = arith.constant 0 : i32
    %c0_i32_1 = arith.constant 0 : i32
    return %c0_i32, %c0_i32_0 : i32, i32
  }
  func.func @transform_4(%arg0: i32) -> (i32, i32) {
    %c0_i32 = arith.constant 0 : i32
    %c0_i32_0 = arith.constant 0 : i32
    %c0_i32_1 = arith.constant 0 : i32
    return %c0_i32, %c0_i32_0 : i32, i32
  }
  func.func @transform_5(%arg0: i32) -> (i32, i32, i32) {
    %c0_i32 = arith.constant 0 : i32
    %c0_i32_0 = arith.constant 0 : i32
    %c0_i32_1 = arith.constant 0 : i32
    %c0_i32_2 = arith.constant 0 : i32
    return %c0_i32, %c0_i32_0, %c0_i32_1 : i32, i32, i32
  }
}

</mosaic_0001>

<bundles_post_ra>
// kernel: double_conv_forward.1
= control target key start
LH: loop header
LB: loop body
LE: loop exit
PB: predicated region body
PF: predicated region fallthrough
CT: control target
= control target key end

     0   :  { %vm33_vm0 = vcmask 1043456   ;;  %s2965_s24 = smov 112   ;;  %s2966_s25 = smov 111   ;;  %vm71_vm1 = vcmask 916480   ;;  %vm42_vm2 = vcmask 908288   ;;  %vm342_vm3 = vcmask 924672   ;;  %s3671_s3 = inlined_call_operand.vmem [shape: f32[9,512], index: 3, kind: input, shape index: {}]   ;;  %s3672_s0 = inlined_call_operand.vmem [shape: f32[4,768], index: 0, kind: input, shape index: {}]   ;;  %s3673_s1 = inlined_call_operand.vmem [shape: f32[9,8,4], index: 1, kind: input, shape index: {}]   ;;  %s3674_s4 = inlined_call_operand.vmem [shape: f32[8,4], index: 4, kind: input, shape index: {}]   ;;  %s3675_s2 = inlined_call_operand.vmem [shape: f32[9,8,8], index: 2, kind: input, shape index: {}]   ;;  %s3676_s5 = inlined_call_operand.vmem [shape: f32[2,8,256], index: 5, kind: output, shape index: {}]  }
   0x1   :  { %v2722_v0 = vld [vmem:[%s3671_s3 + $0x1] ss:$8 sm:$0xf]  ;;  %v24_v1 = vld [vmem:[%s3671_s3] ss:$8 sm:$0xf] }
   0x2   :  { %v57_v2 = vperm.slane %v2722_v0, 0  ;;  %v58_v3 = vperm.slane %v2722_v0, 1  ;;  %v27_v4 = vperm.slane %v24_v1, 0  ;;  %v28_v5 = vperm.slane %v24_v1, 1  ;;  %s2967_s28 = smov 113   ;;  %s2968_s8 = smov 127  }
   0x3   :  { %v60_v8 = vperm.slane %v2722_v0, 3  ;;  %v30_v9 = vperm.slane %v24_v1, 3  ;;  %v2740_v12 = vld [vmem:[%s3671_s3 + $0x2] ss:$8 sm:$0xf]  ;;  %v59_v13 = vperm.slane %v2722_v0, 2 }
   0x4   :  { %v61_v6 = vrot.slane %v58_v3, 4  ;;  %v31_v7 = vrot.slane %v28_v5, 4  ;;  %v29_v14 = vperm.slane %v24_v1, 2  ;;  %v2750_v15 = vld [vmem:[%s3671_s3 + $0x3] ss:$8 sm:$0xf] }
   0x5   :  { %v62_v16 = vrot.slane %v60_v8, 4  ;;  %v32_v17 = vrot.slane %v30_v9, 4  ;;  %v328_v18 = vperm.slane %v2740_v12, 0  ;;  %v329_v19 = vperm.slane %v2740_v12, 1  ;;  %s2969_s11 = smov 1   ;;  %s2970_s12 = smov 15  }
   0x6   :  { %v63_v10 = vsel %vm33_vm0, %v57_v2, %v61_v6  ;;  %v34_v11 = vsel %vm33_vm0, %v27_v4, %v31_v7  ;;  %v331_v21 = vperm.slane %v2740_v12, 3  ;;  %v484_v22 = vperm.slane %v2750_v15, 1  ;;  %v2770_v33 = vld [vmem:[%s3671_s3 + $0x5] ss:$8 sm:$0xf]  ;;  %s2971_s15 = smov 16  }
   0x7   :  { %65 = vrot.lane.b32.xlu0 %v63_v10, %s2965_s24  ;;  %36 = vrot.lane.b32.xlu1 %v34_v11, %s2966_s25  ;;  %v332_v20 = vrot.slane %v329_v19, 4  ;;  %v64_v23 = vsel %vm33_vm0, %v59_v13, %v62_v16  ;;  %v35_v24 = vsel %vm33_vm0, %v29_v14, %v32_v17  ;;  %v486_v25 = vperm.slane %v2750_v15, 3  ;;  %v2780_v34 = vld [vmem:[%s3671_s3 + $0x6] ss:$8 sm:$0xf]  ;;  %s2972_s16 = smov 17  }
   0x8   :  { %v330_v27 = vperm.slane %v2740_v12, 2  ;;  %v333_v28 = vrot.slane %v331_v21, 4  ;;  %v483_v29 = vperm.slane %v2750_v15, 0  ;;  %v487_v30 = vrot.slane %v484_v22, 4  ;;  %v21_v10 = vld [vmem:[%s3672_s0] sm:$0xff]  ;;  %v3074_v22 = vld [vmem:[%s3672_s0 + $0x8] sm:$0xff] }
   0x9   :  { %v334_v26 = vsel %vm33_vm0, %v328_v18, %v332_v20  ;;  %v485_v31 = vperm.slane %v2750_v15, 2  ;;  %v488_v32 = vrot.slane %v486_v25, 4  ;;  %v762_v36 = vperm.slane %v2770_v33, 1  ;;  %v2790_v47 = vld [vmem:[%s3671_s3 + $0x7] ss:$8 sm:$0xf] }
   0xa   :  { %336 = vrot.lane.b32.xlu2 %v334_v26, %s2967_s28  ;;  %v335_v35 = vsel %vm33_vm0, %v330_v27, %v333_v28  ;;  %v489_v37 = vsel %vm33_vm0, %v483_v29, %v487_v30  ;;  %v764_v39 = vperm.slane %v2770_v33, 3  ;;  %v915_v40 = vperm.slane %v2780_v34, 1  ;;  %v2800_v60 = vld [vmem:[%s3671_s3 + $0x20] ss:$8 sm:$0xf] }
   0xb   :  { %v490_v38 = vsel %vm33_vm0, %v485_v31, %v488_v32  ;;  %v761_v41 = vperm.slane %v2770_v33, 0  ;;  %v765_v42 = vrot.slane %v762_v36, 4  ;;  %v763_v43 = vperm.slane %v2770_v33, 2  ;;  %v23_v19 = vld [vmem:[%s3672_s0 + $0x10] sm:$0xf] }
   0xc   :  { %v766_v44 = vrot.slane %v764_v39, 4  ;;  %v914_v45 = vperm.slane %v2780_v34, 0  ;;  %v918_v46 = vrot.slane %v915_v40, 4  ;;  %v917_v49 = vperm.slane %v2780_v34, 3 }
   0xd   :  { %v767_v48 = vsel %vm33_vm0, %v761_v41, %v765_v42  ;;  %v1068_v52 = vperm.slane %v2790_v47, 1  ;;  %v1070_v53 = vperm.slane %v2790_v47, 3  ;;  %v916_v54 = vperm.slane %v2780_v34, 2 }
   0xe   :  { %v768_v50 = vsel %vm33_vm0, %v763_v43, %v766_v44  ;;  %v920_v51 = vsel %vm33_vm0, %v914_v45, %v918_v46  ;;  %v919_v55 = vrot.slane %v917_v49, 4  ;;  %v1067_v56 = vperm.slane %v2790_v47, 0  ;;  %v2760_v45 = vld [vmem:[%s3671_s3 + $0x4] ss:$8 sm:$0xf] }
   0xf   :  { %67 = vrot.lane.b32.xlu0 %v64_v23, %s2965_s24  ;;  %38 = vrot.lane.b32.xlu1 %v35_v24, %s2966_s25  ;;  %v1071_v57 = vrot.slane %v1068_v52, 4  ;;  %v1069_v58 = vperm.slane %v2790_v47, 2  ;;  %v1072_v59 = vrot.slane %v1070_v53, 4  ;;  %v1221_v0 = vperm.slane %v2800_v60, 1 }
  0x10   :  { %v921_v61 = vsel %vm33_vm0, %v916_v54, %v919_v55  ;;  %v1220_v1 = vperm.slane %v2800_v60, 0  ;;  %v1223_v4 = vperm.slane %v2800_v60, 3  ;;  %v1222_v5 = vperm.slane %v2800_v60, 2 }
  0x11   :  { %v1073_v62 = vsel %vm33_vm0, %v1067_v56, %v1071_v57  ;;  %v1074_v63 = vsel %vm33_vm0, %v1069_v58, %v1072_v59  ;;  %v1224_v2 = vrot.slane %v1221_v0, 4  ;;  %vm497_vm4 = vcmask 1039360  }
  0x12   :  { %338 = vrot.lane.b32.xlu2 %v335_v35, %s2967_s28  ;;  %v1225_v6 = vrot.slane %v1223_v4, 4  ;;  %v638_v54 = vperm.slane %v2760_v45, 1  ;;  %v637_v57 = vperm.slane %v2760_v45, 0  ;;  %vm530_vm5 = vcmask 7168  }
  0x13   :  { %v1226_v3 = vsel %vm33_vm0, %v1220_v1, %v1224_v2  ;;  %v640_v1 = vperm.slane %v2760_v45, 3  ;;  %v477_v2 = vld [vmem:[%s3672_s0 + $0x10] sm:$0xf]  ;;  %vm375_vm6 = vcmask 121856   ;;  %vm104_vm7 = vcmask 130048  }
  0x14   :  { %v1227_v7 = vsel %vm33_vm0, %v1222_v5, %v1225_v6  ;;  %v3109_v6 = vld [vmem:[%s3672_s0 + $0x4] sm:$0xff]  ;;  %vm224_vm8 = vcmask 138240   ;;  %vm109_vm9 = vcmask 31744   ;;  %vm1521_vm13 = vcmask 64512  }
  0x17   :  { %491 = vrot.lane.b32.xlu0 %v489_v37, %s2968_s8  ;;  %493 = vrot.lane.b32.xlu1 %v490_v38, %s2968_s8 }
  0x1a   :  { %769 = vrot.lane.b32.xlu2 %v767_v48, %s2969_s11 }
  0x1f   :  { %771 = vrot.lane.b32.xlu0 %v768_v50, %s2969_s11  ;;  %922 = vrot.lane.b32.xlu1 %v920_v51, %s2970_s12  ;;  %v322_v50 = vld [vmem:[%s3672_s0 + $0x10] sm:$0xf] }
  0x22   :  { %924 = vrot.lane.b32.xlu2 %v921_v61, %s2970_s12 }
  0x27   :  { %1075 = vrot.lane.b32.xlu0 %v1073_v62, %s2971_s15  ;;  %1077 = vrot.lane.b32.xlu1 %v1074_v63, %s2971_s15  ;;  %v641_v62 = vrot.slane %v638_v54, 4 }
  0x2a   :  { %1230 = vrot.lane.b32.xlu2 %v1227_v7, %s2972_s16  ;;  %v643_v7 = vsel %vm33_vm0, %v637_v57, %v641_v62 }
  0x2f   :  { %1228 = vrot.lane.b32.xlu1 %v1226_v3, %s2972_s16 }
  0x64   :  { %v337_v15 = vpop.permute.xlu2 %336 }
  0x65   :  { %v340_v30 = vrot.slane %v337_v15, 4 }
  0x67   :  { %v343_v35 = vsel %vm342_vm3, %v340_v30, %v337_v15  ;;  %v647_v15 = vmul.f32 %v3109_v6, %v643_v7 }
  0x68   :  { %v349_v39 = vmul.f32 %v343_v35, %v21_v10 }
  0x6c   :  { %v339_v31 = vpop.permute.xlu2 %338 }
  0x6d   :  { %v341_v33 = vrot.slane %v339_v31, 4 }
  0x6f   :  { %v344_v40 = vsel %vm33_vm0, %v340_v30, %v341_v33  ;;  %v351_v55 = vmul.f32 %v341_v33, %v322_v50 }
  0x70   :  { %v345_v48 = vsel %vm342_vm3, %v344_v40, %v339_v31 }
  0x71   :  { %v350_v52 = vmul.f32 %v345_v48, %v3074_v22 }
  0x74   :  { %v770_v5 = vpop.permute.xlu2 %769 }
  0x79   :  { %v66_v8 = vpop.permute.xlu0 %65  ;;  %v37_v9 = vpop.permute.xlu1 %36 }
  0x7a   :  { %v69_v11 = vrot.slane %v66_v8, 4  ;;  %v40_v13 = vrot.slane %v37_v9, 4 }
  0x7c   :  { %v72_v12 = vsel %vm71_vm1, %v69_v11, %v66_v8  ;;  %v43_v16 = vsel %vm42_vm2, %v40_v13, %v37_v9  ;;  %v639_v9 = vperm.slane %v2760_v45, 2 }
  0x7d   :  { %v78_v14 = vmul.f32 %v72_v12, %v21_v10  ;;  %v49_v21 = vmul.f32 %v43_v16, %v21_v10  ;;  %v3115_v12 = vld [vmem:[%s3672_s0 + $0xc] sm:$0xff]  ;;  %v773_v16 = vrot.slane %v770_v5, 4 }
  0x7f   :  { %84 = vst [vmem:[#allocation1] ss:$2 sm:$0xff] %v78_v14 }
  0x81   :  { %v68_v17 = vpop.permute.xlu0 %67  ;;  %v39_v18 = vpop.permute.xlu1 %38 }
  0x82   :  { %v70_v20 = vrot.slane %v68_v17, 4  ;;  %v41_v24 = vrot.slane %v39_v18, 4 }
  0x84   :  { %v73_v23 = vsel %vm33_vm0, %v69_v11, %v70_v20  ;;  %v80_v26 = vmul.f32 %v70_v20, %v23_v19  ;;  %v44_v32 = vsel %vm33_vm0, %v40_v13, %v41_v24  ;;  %v51_v36 = vmul.f32 %v41_v24, %v23_v19 }
  0x85   :  { %v74_v25 = vsel %vm71_vm1, %v73_v23, %v68_v17  ;;  %v45_v34 = vsel %vm42_vm2, %v44_v32, %v39_v18  ;;  %v755_v18 = vld [vmem:[%s3672_s0 + $0x14] sm:$0xf]  ;;  %v775_v23 = vsel %vm530_vm5, %v773_v16, %v770_v5 }
  0x86   :  { %v89_v27 = vld.sshfl [vmem:[#allocation1] sm:$0xff pattern:$0x75316420]  ;;  %v90_v28 = vld.sshfl [vmem:[#allocation1 + $0x8] sm:$0xff pattern:$0x75316420]  ;;  %v79_v29 = vmul.f32 %v74_v25, %v3074_v22  ;;  %v50_v38 = vmul.f32 %v45_v34, %v3074_v22 }
  0x87   :  { %204 = vst [vmem:[#allocation1] ss:$2 sm:$0xff] %v49_v21  ;;  %96 = vrot.lane.b32.xlu0 %v90_v28, %s2971_s15  ;;  %v925_v28 = vpop.permute.xlu2 %924  ;;  %v908_v34 = vld [vmem:[%s3672_s0 + $0x14] sm:$0xf] }
  0x88   :  { %86 = vst [vmem:[#allocation1 + $0x10] ss:$2 sm:$0xff] %v79_v29  ;;  %v781_v29 = vmul.f32 %v775_v23, %v3109_v6  ;;  %v927_v35 = vrot.slane %v925_v28, 4 }
  0x89   :  { %88 = vst [vmem:[#allocation1 + $0x20] ss:$2 sm:$0xff] %v80_v26  ;;  %v492_v37 = vpop.permute.xlu0 %491  ;;  %v494_v44 = vpop.permute.xlu1 %493 }
  0x8a   :  { %v495_v47 = vrot.slane %v492_v37, 4  ;;  %v496_v51 = vrot.slane %v494_v44, 4 }
  0x8c   :  { %v498_v53 = vsel %vm497_vm4, %v495_v47, %v492_v37  ;;  %v499_v56 = vsel %vm33_vm0, %v495_v47, %v496_v51  ;;  %v506_v8 = vmul.f32 %v496_v51, %v477_v2  ;;  %v1061_v51 = vld [vmem:[%s3672_s0 + $0x14] sm:$0xf] }
  0x8d   :  { %v504_v58 = vmul.f32 %v498_v53, %v21_v10  ;;  %v500_v63 = vsel %vm497_vm4, %v499_v56, %v494_v44  ;;  %v642_v10 = vrot.slane %v640_v1, 4 }
  0x8e   :  { %v210_v43 = vld.sshfl [vmem:[#allocation1 + $0x8] sm:$0xff pattern:$0x75316420]  ;;  %v209_v49 = vld.sshfl [vmem:[#allocation1] sm:$0xff pattern:$0x75316420]  ;;  %v505_v4 = vmul.f32 %v500_v63, %v3074_v22 }
  0x8f   :  { %v91_v41 = vld.sshfl [vmem:[#allocation1 + $0x10] sm:$0xff pattern:$0x75316420]  ;;  %v92_v42 = vld.sshfl [vmem:[#allocation1 + $0x18] sm:$0xff pattern:$0x75316420]  ;;  %v644_v20 = vsel %vm33_vm0, %v639_v9, %v642_v10 }
  0x90   :  { %v93_v46 = vld.sshfl [vmem:[#allocation1 + $0x20] sm:$0xff pattern:$0x75316420]  ;;  %206 = vst [vmem:[#allocation1 + $0x10] ss:$2 sm:$0xff] %v50_v38  ;;  %100 = vrot.lane.b32.xlu1 %v92_v42, %s2971_s15  ;;  %98 = vrot.lane.b32.xlu0 %v91_v41, %s2971_s15  ;;  %v648_v24 = vmul.f32 %v3115_v12, %v644_v20  ;;  %v936_v41 = vmul.f32 %v927_v35, %v908_v34 }
  0x91   :  { %208 = vst [vmem:[#allocation1 + $0x20] ss:$2 sm:$0xff] %v51_v36  ;;  %102 = vrot.lane.b32.xlu2 %v93_v46, %s2971_s15  ;;  %v772_v11 = vpop.permute.xlu0 %771  ;;  %v923_v26 = vpop.permute.xlu1 %922 }
  0x92   :  { %355 = vst [vmem:[#allocation1] ss:$2 sm:$0xff] %v349_v39  ;;  %v774_v19 = vrot.slane %v772_v11, 4  ;;  %v926_v36 = vrot.slane %v923_v26, 4 }
  0x94   :  { %v783_v25 = vmul.f32 %v774_v19, %v755_v18  ;;  %v928_v40 = vsel %vm375_vm6, %v926_v36, %v923_v26  ;;  %v929_v44 = vsel %vm33_vm0, %v926_v36, %v927_v35 }
  0x95   :  { %v934_v45 = vmul.f32 %v928_v40, %v3109_v6  ;;  %v930_v50 = vsel %vm375_vm6, %v929_v44, %v925_v28  ;;  %v25_v44 = vld [vmem:[%s3673_s1] sm:$0xff] }
  0x97   :  { %v212_v59 = vld.sshfl [vmem:[#allocation1 + $0x18] sm:$0xff pattern:$0x75316420]  ;;  %v211_v60 = vld.sshfl [vmem:[#allocation1 + $0x10] sm:$0xff pattern:$0x75316420] }
  0x98   :  { %v213_v61 = vld.sshfl [vmem:[#allocation1 + $0x20] sm:$0xff pattern:$0x75316420]  ;;  %216 = vrot.lane.b32.xlu1 %v210_v43, %s2972_s16  ;;  %357 = vst [vmem:[#allocation1 + $0x10] ss:$2 sm:$0xff] %v350_v52 }
  0x99   :  { %359 = vst [vmem:[#allocation1 + $0x20] ss:$2 sm:$0xff] %v351_v55  ;;  %94 = vrot.lane.b32.xlu2 %v89_v27, %s2971_s15  ;;  %222 = vrot.lane.b32.xlu0 %v213_v61, %s2972_s16  ;;  %v360_v0 = vld.sshfl [vmem:[#allocation1] sm:$0xff pattern:$0x75316420]  ;;  %v776_v27 = vsel %vm33_vm0, %v773_v16, %v774_v19  ;;  %v1076_v42 = vpop.permute.xlu0 %1075  ;;  %v1078_v43 = vpop.permute.xlu1 %1077  ;;  %v935_v55 = vmul.f32 %v930_v50, %v3115_v12 }
  0x9a   :  { %v361_v3 = vld.sshfl [vmem:[#allocation1 + $0x8] sm:$0xff pattern:$0x75316420]  ;;  %v777_v33 = vsel %vm530_vm5, %v776_v27, %v772_v11  ;;  %v1080_v52 = vrot.slane %v1078_v43, 4 }
  0x9b   :  { %510 = vst [vmem:[#allocation1] ss:$2 sm:$0xff] %v504_v58  ;;  %v782_v39 = vmul.f32 %v777_v33, %v3115_v12 }
  0x9c   :  { %v1089_v57 = vmul.f32 %v1080_v52, %v1061_v51 }
  0x9f   :  { %v362_v13 = vld.sshfl [vmem:[#allocation1 + $0x10] sm:$0xff pattern:$0x75316420]  ;;  %v363_v14 = vld.sshfl [vmem:[#allocation1 + $0x18] sm:$0xff pattern:$0x75316420] }
  0xa0   :  { %218 = vrot.lane.b32.xlu1 %v211_v60, %s2972_s16  ;;  %v364_v17 = vld.sshfl [vmem:[#allocation1 + $0x20] sm:$0xff pattern:$0x75316420]  ;;  %512 = vst [vmem:[#allocation1 + $0x10] ss:$2 sm:$0xff] %v505_v4  ;;  %v1231_v60 = vpop.permute.xlu2 %1230 }
  0xa1   :  { %220 = vrot.lane.b32.xlu2 %v212_v59, %s2972_s16  ;;  %214 = vrot.lane.b32.xlu0 %v209_v49, %s2972_s16  ;;  %514 = vst [vmem:[#allocation1 + $0x20] ss:$2 sm:$0xff] %v506_v8  ;;  %v1079_v49 = vrot.slane %v1076_v42, 4  ;;  %v1229_v58 = vpop.permute.xlu1 %1228  ;;  %v1233_v4 = vrot.slane %v1231_v60, 4 }
  0xa2   :  { %v515_v21 = vld.sshfl [vmem:[#allocation1] sm:$0xff pattern:$0x75316420]  ;;  %v516_v22 = vld.sshfl [vmem:[#allocation1 + $0x8] sm:$0xff pattern:$0x75316420] }
  0xa3   :  { %651 = vst [vmem:[#allocation1] ss:$2 sm:$0xff] %v647_v15  ;;  %v1081_v56 = vsel %vm104_vm7, %v1079_v49, %v1076_v42  ;;  %v1082_v59 = vsel %vm33_vm0, %v1079_v49, %v1080_v52  ;;  %v1232_v1 = vrot.slane %v1229_v58, 4 }
  0xa4   :  { %v1087_v61 = vmul.f32 %v1081_v56, %v3109_v6  ;;  %v1083_v2 = vsel %vm104_vm7, %v1082_v59, %v1078_v43  ;;  %v2741_v56 = vld [vmem:[%s3673_s1 + $0x10] sm:$0xff] }
  0xa5   :  { %v1088_v8 = vmul.f32 %v1083_v2, %v3115_v12  ;;  %v1234_v9 = vsel %vm224_vm8, %v1232_v1, %v1229_v58  ;;  %v1235_v11 = vsel %vm33_vm0, %v1232_v1, %v1233_v4  ;;  %v2751_v1 = vld [vmem:[%s3673_s1 + $0x18] sm:$0xff] }
  0xa7   :  { %v517_v30 = vld.sshfl [vmem:[#allocation1 + $0x10] sm:$0xff pattern:$0x75316420]  ;;  %v3129_v31 = vld.sshfl [vmem:[#allocation1 + $0x18] sm:$0xff pattern:$0x75316420] }
  0xa8   :  { %373 = vrot.lane.b32.xlu1 %v364_v17, %s2970_s12  ;;  %v519_v32 = vld.sshfl [vmem:[#allocation1 + $0x20] sm:$0xff pattern:$0x75316420]  ;;  %653 = vst [vmem:[#allocation1 + $0x10] ss:$2 sm:$0xff] %v648_v24  ;;  %v1236_v17 = vsel %vm224_vm8, %v1235_v11, %v1231_v60 }
  0xa9   :  { %365 = vrot.lane.b32.xlu2 %v360_v0, %s2970_s12  ;;  %367 = vrot.lane.b32.xlu0 %v361_v3, %s2970_s12  ;;  %791 = vst [vmem:[#allocation1 + $0x20] ss:$2 sm:$0xff] %v783_v25  ;;  %v1214_v3 = vld [vmem:[%s3672_s0 + $0x14] sm:$0xf]  ;;  %v1241_v20 = vmul.f32 %v1236_v17, %v3115_v12 }
  0xaa   :  { %v3138_v37 = vld.sshfl [vmem:[#allocation1] sm:$0xff pattern:$0x75316420]  ;;  %v3140_v38 = vld.sshfl [vmem:[#allocation1 + $0x8] sm:$0xff pattern:$0x75316420]  ;;  %v1242_v10 = vmul.f32 %v1233_v4, %v1214_v3 }
  0xab   :  { %787 = vst [vmem:[#allocation1] ss:$2 sm:$0xff] %v781_v29  ;;  %v2723_v29 = vld [vmem:[%s3673_s1 + $0x8] sm:$0xff] }
  0xaf   :  { %v3146_v46 = vld.sshfl [vmem:[#allocation1 + $0x10] sm:$0xff pattern:$0x75316420]  ;;  %v3148_v47 = vld.sshfl [vmem:[#allocation1 + $0x18] sm:$0xff pattern:$0x75316420] }
  0xb0   :  { %520 = vrot.lane.b32.xlu1 %v515_v21, %s2969_s11  ;;  %v796_v48 = vld.sshfl [vmem:[#allocation1 + $0x20] sm:$0xff pattern:$0x75316420]  ;;  %789 = vst [vmem:[#allocation1 + $0x10] ss:$2 sm:$0xff] %v782_v39 }
  0xb1   :  { %369 = vrot.lane.b32.xlu2 %v362_v13, %s2970_s12  ;;  %371 = vrot.lane.b32.xlu0 %v363_v14, %s2970_s12  ;;  %944 = vst [vmem:[#allocation1 + $0x20] ss:$2 sm:$0xff] %v936_v41  ;;  %v1240_v13 = vmul.f32 %v1234_v9, %v3109_v6  ;;  %v2761_v9 = vld [vmem:[%s3673_s1 + $0x20] sm:$0xff] }
  0xb2   :  { %v792_v53 = vld.sshfl [vmem:[#allocation1] sm:$0xff pattern:$0x75316420]  ;;  %v793_v54 = vld.sshfl [vmem:[#allocation1 + $0x8] sm:$0xff pattern:$0x75316420] }
  0xb3   :  { %940 = vst [vmem:[#allocation1] ss:$2 sm:$0xff] %v934_v45 }
  0xb7   :  { %v794_v62 = vld.sshfl [vmem:[#allocation1 + $0x10] sm:$0xff pattern:$0x75316420]  ;;  %v795_v63 = vld.sshfl [vmem:[#allocation1 + $0x18] sm:$0xff pattern:$0x75316420] }
  0xb8   :  { %524 = vrot.lane.b32.xlu1 %v517_v30, %s2969_s11  ;;  %v949_v0 = vld.sshfl [vmem:[#allocation1 + $0x20] sm:$0xff pattern:$0x75316420]  ;;  %942 = vst [vmem:[#allocation1 + $0x10] ss:$2 sm:$0xff] %v935_v55 }
  0xb9   :  { %522 = vrot.lane.b32.xlu2 %v516_v22, %s2969_s11  ;;  %528 = vrot.lane.b32.xlu0 %v519_v32, %s2969_s11  ;;  %1097 = vst [vmem:[#allocation1 + $0x20] ss:$2 sm:$0xff] %v1089_v57 }
  0xba   :  { %v945_v5 = vld.sshfl [vmem:[#allocation1] sm:$0xff pattern:$0x75316420]  ;;  %v946_v7 = vld.sshfl [vmem:[#allocation1 + $0x8] sm:$0xff pattern:$0x75316420] }
  0xbb   :  { %1093 = vst [vmem:[#allocation1] ss:$2 sm:$0xff] %v1087_v61 }
  0xbf   :  { %v947_v14 = vld.sshfl [vmem:[#allocation1 + $0x10] sm:$0xff pattern:$0x75316420]  ;;  %v948_v15 = vld.sshfl [vmem:[#allocation1 + $0x18] sm:$0xff pattern:$0x75316420] }
  0xc0   :  { %958 = vrot.lane.b32.xlu1 %v949_v0, %s2967_s28  ;;  %1095 = vst [vmem:[#allocation1 + $0x10] ss:$2 sm:$0xff] %v1088_v8  ;;  %v1102_v16 = vld.sshfl [vmem:[#allocation1 + $0x20] sm:$0xff pattern:$0x75316420] }
  0xc1   :  { %526 = vrot.lane.b32.xlu2 %v3129_v31, %s2969_s11  ;;  %797 = vrot.lane.b32.xlu0 %v792_v53, %s2968_s8  ;;  %1250 = vst [vmem:[#allocation1 + $0x20] ss:$2 sm:$0xff] %v1242_v10 }
  0xc2   :  { %v1098_v18 = vld.sshfl [vmem:[#allocation1] sm:$0xff pattern:$0x75316420]  ;;  %v1099_v19 = vld.sshfl [vmem:[#allocation1 + $0x8] sm:$0xff pattern:$0x75316420] }
  0xc3   :  { %1246 = vst [vmem:[#allocation1] ss:$2 sm:$0xff] %v1240_v13 }
  0xc7   :  { %v1101_v6 = vld.sshfl [vmem:[#allocation1 + $0x18] sm:$0xff pattern:$0x75316420]  ;;  %v1100_v21 = vld.sshfl [vmem:[#allocation1 + $0x10] sm:$0xff pattern:$0x75316420] }
  0xc8   :  { %799 = vrot.lane.b32.xlu1 %v793_v54, %s2968_s8  ;;  %1248 = vst [vmem:[#allocation1 + $0x10] ss:$2 sm:$0xff] %v1241_v20  ;;  %v1255_v25 = vld.sshfl [vmem:[#allocation1 + $0x20] sm:$0xff pattern:$0x75316420] }
  0xc9   :  { %805 = vrot.lane.b32.xlu2 %v796_v48, %s2968_s8  ;;  %801 = vrot.lane.b32.xlu0 %v794_v62, %s2968_s8 }
  0xca   :  { %v1252_v24 = vld.sshfl [vmem:[#allocation1 + $0x8] sm:$0xff pattern:$0x75316420]  ;;  %v1251_v26 = vld.sshfl [vmem:[#allocation1] sm:$0xff pattern:$0x75316420] }
  0xcf   :  { %v1254_v12 = vld.sshfl [vmem:[#allocation1 + $0x18] sm:$0xff pattern:$0x75316420]  ;;  %v1253_v22 = vld.sshfl [vmem:[#allocation1 + $0x10] sm:$0xff pattern:$0x75316420] }
  0xd0   :  { %803 = vrot.lane.b32.xlu1 %v795_v63, %s2968_s8 }
  0xd1   :  { %950 = vrot.lane.b32.xlu2 %v945_v5, %s2967_s28  ;;  %952 = vrot.lane.b32.xlu0 %v946_v7, %s2967_s28 }
  0xd8   :  { %1103 = vrot.lane.b32.xlu1 %v1098_v18, %s2965_s24 }
  0xd9   :  { %954 = vrot.lane.b32.xlu2 %v947_v14, %s2967_s28  ;;  %956 = vrot.lane.b32.xlu0 %v948_v15, %s2967_s28 }
  0xe0   :  { %1107 = vrot.lane.b32.xlu1 %v1100_v21, %s2965_s24  ;;  %v2781_v21 = vld [vmem:[%s3673_s1 + $0x30] sm:$0xff] }
  0xe1   :  { %1109 = vrot.lane.b32.xlu2 %v1101_v6, %s2965_s24  ;;  %1111 = vrot.lane.b32.xlu0 %v1102_v16, %s2965_s24 }
  0xe8   :  { %1262 = vrot.lane.b32.xlu1 %v1254_v12, %s2966_s25 }
  0xe9   :  { %1105 = vrot.lane.b32.xlu2 %v1099_v19, %s2965_s24  ;;  %1260 = vrot.lane.b32.xlu0 %v1253_v22, %s2966_s25 }
  0xeb   :  { %v103_v23 = vpop.permute.xlu2 %102 }
  0xf0   :  { %1258 = vrot.lane.b32.xlu1 %v1252_v24, %s2966_s25 }
  0xf1   :  { %1264 = vrot.lane.b32.xlu2 %v1255_v25, %s2966_s25  ;;  %1256 = vrot.lane.b32.xlu0 %v1251_v26, %s2966_s25 }
  0xf3   :  { %v95_v27 = vpop.permute.xlu2 %94 }
  0xf9   :  { %v97_v28 = vpop.permute.xlu0 %96 }
  0xfa   :  { %v105_v30 = vsel %vm104_vm7, %v95_v27, %v97_v28  ;;  %v2791_v27 = vld [vmem:[%s3673_s1 + $0x38] sm:$0xff] }
  0xfb   :  { %v221_v31 = vpop.permute.xlu2 %220  ;;  %2724 = vmatpush.msk.msra.mxu0 %vm33_vm0, %v105_v30 }
  0xfc   :  { %2725 = vmatmul.msk.f32.vlgmr.msra.gmra.mxu0 %vm109_vm9, %v2723_v29 }
 0x102   :  { %v101_v32 = vpop.permute.xlu1 %100  ;;  %v99_v33 = vpop.permute.xlu0 %98 }
 0x103   :  { %v366_v34 = vpop.permute.xlu2 %365  ;;  %v106_v35 = vsel %vm104_vm7, %v97_v28, %v99_v33  ;;  %v107_v36 = vsel %vm104_vm7, %v99_v33, %v101_v32  ;;  %v108_v39 = vsel %vm104_vm7, %v101_v32, %v103_v23 }
 0x104   :  { %2726 = vmatpush.msk.msra.mxu1 %vm33_vm0, %v106_v35  ;;  %2728 = vmatpush.msk.msra.mxu2 %vm33_vm0, %v107_v36 }
 0x105   :  { %2730 = vmatpush.msk.msra.mxu3 %vm33_vm0, %v108_v39  ;;  %2727 = vmatmul.msk.f32.vlgmr.msra.gmra.mxu1 %vm109_vm9, %v2723_v29  ;;  %v2801_v39 = vld [vmem:[%s3673_s1 + $0x40] sm:$0xff] }
 0x106   :  { %2729 = vmatmul.msk.f32.vlgmr.msra.gmra.mxu2 %vm109_vm9, %v2723_v29  ;;  %2731 = vmatmul.msk.f32.vlgmr.msra.gmra.mxu3 %vm109_vm9, %v2723_v29 }
 0x10a   :  { %v217_v40 = vpop.permute.xlu1 %216 }
 0x10b   :  { %v370_v41 = vpop.permute.xlu2 %369  ;;  %v223_v42 = vpop.permute.xlu0 %222 }
 0x10c   :  { %v228_v43 = vsel %vm224_vm8, %v221_v31, %v223_v42 }
 0x10d   :  { %2738 = vmatpush.msk.msrb.mxu3 %vm33_vm0, %v228_v43 }
 0x10e   :  { %2739 = vmatmul.msk.f32.vlgmr.msrb.gmra.mxu3 %vm109_vm9, %v25_v44 }
 0x112   :  { %v219_v45 = vpop.permute.xlu1 %218 }
 0x113   :  { %v523_v48 = vpop.permute.xlu2 %522  ;;  %v215_v49 = vpop.permute.xlu0 %214  ;;  %v226_v50 = vsel %vm224_vm8, %v217_v40, %v219_v45  ;;  %v227_v51 = vsel %vm224_vm8, %v219_v45, %v221_v31 }
 0x114   :  { %v225_v52 = vsel %vm224_vm8, %v215_v49, %v217_v40  ;;  %2734 = vmatpush.msk.msrb.mxu1 %vm33_vm0, %v226_v50  ;;  %2736 = vmatpush.msk.msrb.mxu2 %vm33_vm0, %v227_v51 }
 0x115   :  { %2732 = vmatpush.msk.msrb.mxu0 %vm33_vm0, %v225_v52  ;;  %2735 = vmatmul.msk.f32.vlgmr.msrb.gmra.mxu1 %vm109_vm9, %v25_v44 }
 0x116   :  { %2733 = vmatmul.msk.f32.vlgmr.msrb.gmra.mxu0 %vm109_vm9, %v25_v44  ;;  %2737 = vmatmul.msk.f32.vlgmr.msrb.gmra.mxu2 %vm109_vm9, %v25_v44 }
 0x11a   :  { %v374_v53 = vpop.permute.xlu1 %373 }
 0x11b   :  { %v527_v54 = vpop.permute.xlu2 %526  ;;  %v368_v55 = vpop.permute.xlu0 %367 }
 0x11c   :  { %v376_v57 = vsel %vm375_vm6, %v366_v34, %v368_v55  ;;  %v377_v58 = vsel %vm375_vm6, %v368_v55, %v370_v41 }
 0x11d   :  { %2742 = vmatpush.msk.msra.mxu0 %vm33_vm0, %v376_v57  ;;  %2744 = vmatpush.msk.msra.mxu1 %vm33_vm0, %v377_v58 }
 0x11e   :  { %2743 = vmatmul.msk.f32.vlgmr.msra.gmra.mxu0 %vm109_vm9, %v2741_v56  ;;  %2745 = vmatmul.msk.f32.vlgmr.msra.gmra.mxu1 %vm109_vm9, %v2741_v56 }
 0x122   :  { %v521_v59 = vpop.permute.xlu1 %520 }
 0x123   :  { %v806_v60 = vpop.permute.xlu2 %805  ;;  %v372_v61 = vpop.permute.xlu0 %371  ;;  %v531_v62 = vsel %vm530_vm5, %v521_v59, %v523_v48 }
 0x124   :  { %v378_v63 = vsel %vm375_vm6, %v370_v41, %v372_v61  ;;  %v379_v0 = vsel %vm375_vm6, %v372_v61, %v374_v53  ;;  %2752 = vmatpush.msk.msrb.mxu0 %vm33_vm0, %v531_v62 }
 0x125   :  { %2746 = vmatpush.msk.msra.mxu2 %vm33_vm0, %v378_v63  ;;  %2748 = vmatpush.msk.msra.mxu3 %vm33_vm0, %v379_v0 }
 0x126   :  { %2747 = vmatmul.msk.f32.vlgmr.msra.gmra.mxu2 %vm109_vm9, %v2741_v56  ;;  %2749 = vmatmul.msk.f32.vlgmr.msra.gmra.mxu3 %vm109_vm9, %v2741_v56 }
 0x127   :  { %2753 = vmatmul.msk.f32.vlgmr.msrb.gmra.mxu0 %vm109_vm9, %v2751_v1 }
 0x128   :  { %2762 = vmatpush.msk.msra.mxu0 %vm33_vm0, %v3138_v37 }
 0x12a   :  { %v525_v2 = vpop.permute.xlu1 %524 }
 0x12b   :  { %v529_v3 = vpop.permute.xlu0 %528  ;;  %v532_v4 = vsel %vm530_vm5, %v523_v48, %v525_v2  ;;  %v533_v5 = vsel %vm530_vm5, %v525_v2, %v527_v54  ;;  %v951_v7 = vpop.permute.xlu2 %950 }
 0x12c   :  { %v534_v8 = vsel %vm530_vm5, %v527_v54, %v529_v3  ;;  %2754 = vmatpush.msk.msrb.mxu1 %vm33_vm0, %v532_v4  ;;  %2756 = vmatpush.msk.msrb.mxu2 %vm33_vm0, %v533_v5 }
 0x12d   :  { %2758 = vmatpush.msk.msrb.mxu3 %vm33_vm0, %v534_v8  ;;  %2755 = vmatmul.msk.f32.vlgmr.msrb.gmra.mxu1 %vm109_vm9, %v2751_v1 }
 0x12e   :  { %2757 = vmatmul.msk.f32.vlgmr.msrb.gmra.mxu2 %vm109_vm9, %v2751_v1  ;;  %2759 = vmatmul.msk.f32.vlgmr.msrb.gmra.mxu3 %vm109_vm9, %v2751_v1 }
 0x12f   :  { %2763 = vmatmul.msk.f32.vlgmr.msra.gmra.mxu0 %vm109_vm9, %v2761_v9  ;;  %2764 = vmatpush.msk.msra.mxu1 %vm33_vm0, %v3140_v38  ;;  %v2771_v38 = vld [vmem:[%s3673_s1 + $0x28] sm:$0xff] }
 0x130   :  { %2766 = vmatpush.msk.msra.mxu2 %vm33_vm0, %v3146_v46  ;;  %2768 = vmatpush.msk.msra.mxu3 %vm33_vm0, %v3148_v47 }
 0x132   :  { %v959_v37 = vpop.permute.xlu1 %958 }
 0x133   :  { %v798_v10 = vpop.permute.xlu0 %797  ;;  %v955_v11 = vpop.permute.xlu2 %954 }
 0x135   :  { %2765 = vmatmul.msk.f32.vlgmr.msra.gmra.mxu1 %vm109_vm9, %v2761_v9 }
 0x136   :  { %2767 = vmatmul.msk.f32.vlgmr.msra.gmra.mxu2 %vm109_vm9, %v2761_v9  ;;  %2769 = vmatmul.msk.f32.vlgmr.msra.gmra.mxu3 %vm109_vm9, %v2761_v9 }
 0x13a   :  { %v800_v13 = vpop.permute.xlu1 %799 }
 0x13b   :  { %v807_v14 = vsel %vm497_vm4, %v798_v10, %v800_v13  ;;  %v802_v46 = vpop.permute.xlu0 %801  ;;  %v1110_v47 = vpop.permute.xlu2 %1109 }
 0x13c   :  { %v808_v15 = vsel %vm497_vm4, %v800_v13, %v802_v46  ;;  %2772 = vmatpush.msk.msrb.mxu0 %vm33_vm0, %v807_v14 }
 0x13d   :  { %2774 = vmatpush.msk.msrb.mxu1 %vm33_vm0, %v808_v15  ;;  %2773 = vmatmul.msk.f32.vlgmr.msrb.gmra.mxu0 %vm109_vm9, %v2771_v38 }
 0x13e   :  { %2775 = vmatmul.msk.f32.vlgmr.msrb.gmra.mxu1 %vm109_vm9, %v2771_v38 }
 0x142   :  { %v804_v16 = vpop.permute.xlu1 %803 }
 0x143   :  { %v809_v17 = vsel %vm497_vm4, %v802_v46, %v804_v16  ;;  %v810_v18 = vsel %vm497_vm4, %v804_v16, %v806_v60  ;;  %v953_v19 = vpop.permute.xlu0 %952  ;;  %v1106_v12 = vpop.permute.xlu2 %1105 }
 0x144   :  { %v960_v20 = vsel %vm342_vm3, %v951_v7, %v953_v19  ;;  %v961_v6 = vsel %vm342_vm3, %v953_v19, %v955_v11  ;;  %2776 = vmatpush.msk.msrb.mxu2 %vm33_vm0, %v809_v17  ;;  %2778 = vmatpush.msk.msrb.mxu3 %vm33_vm0, %v810_v18 }
 0x145   :  { %2782 = vmatpush.msk.msra.mxu0 %vm33_vm0, %v960_v20  ;;  %2784 = vmatpush.msk.msra.mxu1 %vm33_vm0, %v961_v6 }
 0x146   :  { %2777 = vmatmul.msk.f32.vlgmr.msrb.gmra.mxu2 %vm109_vm9, %v2771_v38  ;;  %2779 = vmatmul.msk.f32.vlgmr.msrb.gmra.mxu3 %vm109_vm9, %v2771_v38 }
 0x147   :  { %2783 = vmatmul.msk.f32.vlgmr.msra.gmra.mxu0 %vm109_vm9, %v2781_v21  ;;  %2785 = vmatmul.msk.f32.vlgmr.msra.gmra.mxu1 %vm109_vm9, %v2781_v21 }
 0x14a   :  { %v1104_v22 = vpop.permute.xlu1 %1103 }
 0x14b   :  { %v957_v23 = vpop.permute.xlu0 %956  ;;  %v1113_v24 = vsel %vm71_vm1, %v1104_v22, %v1106_v12  ;;  %v1265_v33 = vpop.permute.xlu2 %1264 }
 0x14c   :  { %v962_v25 = vsel %vm342_vm3, %v955_v11, %v957_v23  ;;  %v963_v26 = vsel %vm342_vm3, %v957_v23, %v959_v37  ;;  %2792 = vmatpush.msk.msrb.mxu0 %vm33_vm0, %v1113_v24 }
 0x14d   :  { %2786 = vmatpush.msk.msra.mxu2 %vm33_vm0, %v962_v25  ;;  %2788 = vmatpush.msk.msra.mxu3 %vm33_vm0, %v963_v26 }
 0x14e   :  { %2787 = vmatmul.msk.f32.vlgmr.msra.gmra.mxu2 %vm109_vm9, %v2781_v21  ;;  %2789 = vmatmul.msk.f32.vlgmr.msra.gmra.mxu3 %vm109_vm9, %v2781_v21 }
 0x14f   :  { %2793 = vmatmul.msk.f32.vlgmr.msrb.gmra.mxu0 %vm109_vm9, %v2791_v27 }
 0x152   :  { %v1108_v28 = vpop.permute.xlu1 %1107 }
 0x153   :  { %v1112_v29 = vpop.permute.xlu0 %1111  ;;  %v1114_v30 = vsel %vm71_vm1, %v1106_v12, %v1108_v28  ;;  %v1115_v31 = vsel %vm71_vm1, %v1108_v28, %v1110_v47 }
 0x154   :  { %v1116_v32 = vsel %vm71_vm1, %v1110_v47, %v1112_v29  ;;  %2794 = vmatpush.msk.msrb.mxu1 %vm33_vm0, %v1114_v30  ;;  %2796 = vmatpush.msk.msrb.mxu2 %vm33_vm0, %v1115_v31 }
 0x155   :  { %2798 = vmatpush.msk.msrb.mxu3 %vm33_vm0, %v1116_v32  ;;  %2795 = vmatmul.msk.f32.vlgmr.msrb.gmra.mxu1 %vm109_vm9, %v2791_v27 }
 0x156   :  { %2797 = vmatmul.msk.f32.vlgmr.msrb.gmra.mxu2 %vm109_vm9, %v2791_v27  ;;  %2799 = vmatmul.msk.f32.vlgmr.msrb.gmra.mxu3 %vm109_vm9, %v2791_v27 }
 0x15a   :  { %v1263_v34 = vpop.permute.xlu1 %1262 }
 0x15b   :  { %v1261_v35 = vpop.permute.xlu0 %1260  ;;  %v1269_v36 = vsel %vm42_vm2, %v1263_v34, %v1265_v33 }
 0x15c   :  { %v1268_v40 = vsel %vm42_vm2, %v1261_v35, %v1263_v34  ;;  %2808 = vmatpush.msk.msra.mxu3 %vm33_vm0, %v1269_v36 }
 0x15d   :  { %2806 = vmatpush.msk.msra.mxu2 %vm33_vm0, %v1268_v40 }
 0x15e   :  { %2807 = vmatmul.msk.f32.vlgmr.msra.gmra.mxu2 %vm109_vm9, %v2801_v39  ;;  %2809 = vmatmul.msk.f32.vlgmr.msra.gmra.mxu3 %vm109_vm9, %v2801_v39 }
 0x162   :  { %v1259_v41 = vpop.permute.xlu1 %1258 }
 0x163   :  { %v1267_v42 = vsel %vm42_vm2, %v1259_v41, %v1261_v35  ;;  %v1257_v43 = vpop.permute.xlu0 %1256 }
 0x164   :  { %v1266_v44 = vsel %vm42_vm2, %v1257_v43, %v1259_v41  ;;  %2804 = vmatpush.msk.msra.mxu1 %vm33_vm0, %v1267_v42 }
 0x165   :  { %2802 = vmatpush.msk.msra.mxu0 %vm33_vm0, %v1266_v44  ;;  %2805 = vmatmul.msk.f32.vlgmr.msra.gmra.mxu1 %vm109_vm9, %v2801_v39 }
 0x166   :  { %2803 = vmatmul.msk.f32.vlgmr.msra.gmra.mxu0 %vm109_vm9, %v2801_v39 }
 0x179   :  { %v138_v45 = vpop.f32.mrf.mxu0 }
 0x182   :  { %v158_v48 = vpop.f32.mrf.mxu1 }
 0x189   :  { %v178_v49 = vpop.f32.mrf.mxu2  ;;  %v198_v50 = vpop.f32.mrf.mxu3 }
 0x191   :  { %v317_v54 = vpop.f32.mrf.mxu3 }
 0x192   :  { %v277_v52 = vpop.f32.mrf.mxu1  ;;  %v318_v15 = vadd.f32 %v317_v54, %v198_v50  ;;  %v2810_v54 = vld [vmem:[%s3671_s3 + $0x1] ss:$8 sm:$0xf] }
 0x193   :  { %v257_v51 = vpop.f32.mrf.mxu0  ;;  %v278_v13 = vadd.f32 %v277_v52, %v158_v48 }
 0x194   :  { %v258_v10 = vadd.f32 %v257_v51, %v138_v45 }
 0x199   :  { %v297_v53 = vpop.f32.mrf.mxu2 }
 0x19a   :  { %v298_v46 = vadd.f32 %v297_v53, %v178_v49 }
 0x19b   :  { %v408_v55 = vpop.f32.mrf.mxu0  ;;  %v428_v56 = vpop.f32.mrf.mxu1 }
 0x19c   :  { %v471_v38 = vadd.f32 %v408_v55, %v258_v10  ;;  %v472_v14 = vadd.f32 %v428_v56, %v278_v13  ;;  %v1474_v55 = vperm.slane %v2810_v54, 1  ;;  %v1475_v56 = vperm.slane %v2810_v54, 2 }
 0x19d   :  { %v1476_v10 = vperm.slane %v2810_v54, 3 }
 0x19e   :  { %1479 = vrot.lane.b32.xlu1 %v1474_v55, %s2965_s24 }
 0x1a4   :  { %v563_v59 = vpop.f32.mrf.mxu0 }
 0x1a5   :  { %v626_v17 = vadd.f32 %v563_v59, %v471_v38 }
 0x1a6   :  { %1481 = vrot.lane.b32.xlu1 %v1475_v56, %s2965_s24 }
 0x1a9   :  { %v448_v57 = vpop.f32.mrf.mxu2  ;;  %v468_v58 = vpop.f32.mrf.mxu3 }
 0x1aa   :  { %v583_v60 = vpop.f32.mrf.mxu1  ;;  %v473_v18 = vadd.f32 %v448_v57, %v298_v46  ;;  %v474_v12 = vadd.f32 %v468_v58, %v318_v15  ;;  %v1473_v57 = vperm.slane %v2810_v54, 0  ;;  %v2820_v15 = vld [vmem:[%s3671_s3 + $0x2] ss:$8 sm:$0xf] }
 0x1ab   :  { %v627_v47 = vadd.f32 %v583_v60, %v472_v14 }
 0x1ac   :  { %v686_v63 = vpop.f32.mrf.mxu0 }
 0x1ad   :  { %v749_v22 = vadd.f32 %v686_v63, %v626_v17 }
 0x1ae   :  { %1477 = vrot.lane.b32.xlu1 %v1473_v57, %s2965_s24 }
 0x1b1   :  { %v603_v61 = vpop.f32.mrf.mxu2  ;;  %v623_v62 = vpop.f32.mrf.mxu3 }
 0x1b2   :  { %v706_v0 = vpop.f32.mrf.mxu1  ;;  %v628_v23 = vadd.f32 %v603_v61, %v473_v18  ;;  %v629_v25 = vadd.f32 %v623_v62, %v474_v12 }
 0x1b3   :  { %v750_v20 = vadd.f32 %v706_v0, %v627_v47  ;;  %v1716_v47 = vperm.slane %v2820_v15, 1 }
 0x1b9   :  { %v726_v1 = vpop.f32.mrf.mxu2  ;;  %v746_v2 = vpop.f32.mrf.mxu3 }
 0x1ba   :  { %v839_v3 = vpop.f32.mrf.mxu0  ;;  %v751_v26 = vadd.f32 %v726_v1, %v628_v23  ;;  %v752_v29 = vadd.f32 %v746_v2, %v629_v25 }
 0x1bb   :  { %v859_v4 = vpop.f32.mrf.mxu1  ;;  %v902_v27 = vadd.f32 %v839_v3, %v749_v22  ;;  %v3375_v22 = vld [vmem:[%s3674_s4] sm:$0xff] }
 0x1bc   :  { %v903_v24 = vadd.f32 %v859_v4, %v750_v20  ;;  %v1715_v20 = vperm.slane %v2820_v15, 0 }
 0x1c4   :  { %v992_v8 = vpop.f32.mrf.mxu0  ;;  %v1012_v11 = vpop.f32.mrf.mxu1 }
 0x1c5   :  { %v1056_v28 = vadd.f32 %v1012_v11, %v903_v24  ;;  %v1055_v30 = vadd.f32 %v992_v8, %v902_v27  ;;  %v1441_v8 = vld [vmem:[%s3671_s3] ss:$8 sm:$0xf]  ;;  %v2973_v11 = vmov 0  }
 0x1c6   :  { %2876 = vset.pattern.permute.xlu1 %v2973_v11  ;;  %v1447_v27 = vperm.slane %v1441_v8, 3 }
 0x1c9   :  { %v879_v5 = vpop.f32.mrf.mxu2  ;;  %v899_v7 = vpop.f32.mrf.mxu3 }
 0x1ca   :  { %v904_v31 = vadd.f32 %v879_v5, %v751_v26  ;;  %v905_v33 = vadd.f32 %v899_v7, %v752_v29  ;;  %v2826_v29 = vld [vmem:[%s3671_s3 + $0x3] ss:$8 sm:$0xf] }
 0x1cc   :  { %v1145_v6 = vpop.f32.mrf.mxu0 }
 0x1cd   :  { %v1208_v34 = vadd.f32 %v1145_v6, %v1055_v30  ;;  %v1444_v30 = vperm.slane %v1441_v8, 0 }
 0x1d1   :  { %v1032_v9 = vpop.f32.mrf.mxu2  ;;  %v1052_v37 = vpop.f32.mrf.mxu3 }
 0x1d2   :  { %v1165_v19 = vpop.f32.mrf.mxu1  ;;  %v1057_v35 = vadd.f32 %v1032_v9, %v904_v31  ;;  %v1058_v42 = vadd.f32 %v1052_v37, %v905_v33  ;;  %v1446_v9 = vperm.slane %v1441_v8, 2  ;;  %v1445_v37 = vperm.slane %v1441_v8, 1 }
 0x1d3   :  { %v1209_v32 = vadd.f32 %v1165_v19, %v1056_v28  ;;  %v1717_v28 = vperm.slane %v2820_v15, 2  ;;  %v1857_v31 = vperm.slane %v2826_v29, 3  ;;  %v1855_v33 = vperm.slane %v2826_v29, 1 }
 0x1d4   :  { %1452 = vrot.lane.b32.xlu1 %v1446_v9, %s2966_s25 }
 0x1d9   :  { %v1185_v16 = vpop.f32.mrf.mxu2  ;;  %v1205_v21 = vpop.f32.mrf.mxu3 }
 0x1da   :  { %v1210_v43 = vadd.f32 %v1185_v16, %v1057_v35  ;;  %v1211_v48 = vadd.f32 %v1205_v21, %v1058_v42  ;;  %v1854_v35 = vperm.slane %v2826_v29, 0  ;;  %v1856_v42 = vperm.slane %v2826_v29, 2 }
 0x1e1   :  { %v1338_v39 = vpop.f32.mrf.mxu2  ;;  %v1358_v45 = vpop.f32.mrf.mxu3 }
 0x1e2   :  { %v1318_v36 = vpop.f32.mrf.mxu1  ;;  %v3335_v49 = vadd.f32 %v1338_v39, %v1210_v43  ;;  %v3339_v51 = vadd.f32 %v1358_v45, %v1211_v48  ;;  %v2844_v39 = vld [vmem:[%s3671_s3 + $0x6] ss:$8 sm:$0xf]  ;;  %v2850_v43 = vld [vmem:[%s3671_s3 + $0x7] ss:$8 sm:$0xf] }
 0x1e3   :  { %v1298_v40 = vpop.f32.mrf.mxu0  ;;  %v3331_v41 = vadd.f32 %v1318_v36, %v1209_v32  ;;  %v2838_v32 = vld [vmem:[%s3671_s3 + $0x5] ss:$8 sm:$0xf]  ;;  %v1718_v36 = vperm.slane %v2820_v15, 3  ;;  %v2382_v45 = vperm.slane %v2850_v43, 3  ;;  %v2974_v48 = vmov 1  }
 0x1e4   :  { %v3333_v44 = vadd.f32 %v1298_v40, %v1208_v34  ;;  %v2103_v34 = vperm.slane %v2838_v32, 2  ;;  %v2241_v40 = vperm.slane %v2844_v39, 1  ;;  %v2243_v54 = vperm.slane %v2844_v39, 3 }
 0x1e5   :  { %v2240_v56 = vperm.slane %v2844_v39, 0 }
 0x1e6   :  { %v1365_v50 = vadd.f32 %v3331_v41, %v3333_v44 }
 0x1e8   :  { %v1366_v52 = vadd.f32 %v1365_v50, %v3335_v49  ;;  %v2102_v50 = vperm.slane %v2838_v32, 1 }
 0x1ea   :  { %v1367_v53 = vadd.f32 %v1366_v52, %v3339_v51  ;;  %v2379_v52 = vperm.slane %v2850_v43, 0 }
 0x1ec   :  { %1368 = vadd.xlane.f32.xlu2 %v1367_v53 }
 0x204   :  { %1483 = vrot.lane.b32.xlu2 %v1476_v10, %s2965_s24 }
 0x20c   :  { %1448 = vrot.lane.b32.xlu2 %v1444_v30, %s2966_s25 }
 0x210   :  { %v3359_v46 = vpop.permute.xlu1 %1479 }
 0x214   :  { %1725 = vrot.lane.b32.xlu2 %v1718_v36, %s2967_s28 }
 0x218   :  { %v3365_v6 = vpop.permute.xlu1 %1481 }
 0x219   :  { %v3370_v12 = vsel %vm71_vm1, %v3359_v46, %v3365_v6 }
 0x21c   :  { %1862 = vrot.lane.b32.xlu2 %v1856_v42, %s2968_s8 }
 0x220   :  { %v3405_v53 = vpop.permute.xlu1 %1477 }
 0x224   :  { %2107 = vrot.lane.b32.xlu2 %v2102_v50, %s2969_s11 }
 0x22c   :  { %2250 = vrot.lane.b32.xlu2 %v2243_v54, %s2970_s12 }
 0x234   :  { %2244 = vrot.lane.b32.xlu2 %v2240_v56, %s2970_s12 }
 0x246   :  { %v1453_v55 = vpop.permute.xlu1 %1452 }
 0x25f   :  { %v1369_v58 = vpop.xlane.xlu2 %1368 }
 0x260   :  { %v1370_v59 = vmul.f32 0.001953125, %v1369_v58  ;;  %v2381_v58 = vperm.slane %v2850_v43, 2 }
 0x262   :  { %v1371_v60 = vsub.f32 %v3333_v44, %v1370_v59  ;;  %v1372_v61 = vsub.f32 %v3331_v41, %v1370_v59  ;;  %v1373_v62 = vsub.f32 %v3335_v49, %v1370_v59  ;;  %v1374_v63 = vsub.f32 %v3339_v51, %v1370_v59  ;;  %2387 = vrot.lane.b32.xlu2 %v2381_v58, %s2971_s15 }
 0x264   :  { %v1375_v0 = vmul.f32 %v1371_v60, %v1371_v60  ;;  %v1376_v1 = vmul.f32 %v1372_v61, %v1372_v61  ;;  %v1377_v2 = vmul.f32 %v1373_v62, %v1373_v62  ;;  %v1378_v4 = vmul.f32 %v1374_v63, %v1374_v63 }
 0x265   :  { %v2104_v61 = vperm.slane %v2838_v32, 3  ;;  %v2101_v62 = vperm.slane %v2838_v32, 0  ;;  %v2242_v63 = vperm.slane %v2844_v39, 2 }
 0x266   :  { %v1379_v3 = vadd.f32 %v1376_v1, %v1375_v0  ;;  %v2380_v0 = vperm.slane %v2850_v43, 1 }
 0x268   :  { %v1380_v5 = vadd.f32 %v1379_v3, %v1377_v2  ;;  %v3418_v2 = vld [vmem:[%s3671_s3 + $0x20] ss:$8 sm:$0xf] }
 0x269   :  { %v2519_v3 = vperm.slane %v3418_v2, 1 }
 0x26a   :  { %v1381_v7 = vadd.f32 %v1380_v5, %v1378_v4 }
 0x26b   :  { %2524 = vrot.lane.b32.xlu2 %v2519_v3, %s2972_s16 }
 0x26c   :  { %1382 = vadd.xlane.f32.xlu0 %v1381_v7  ;;  %v1484_v7 = vpop.permute.xlu2 %1483 }
 0x280   :  { %1450 = vrot.lane.b32.xlu0 %v1445_v37, %s2966_s25  ;;  %v1449_v37 = vpop.permute.xlu2 %1448 }
 0x288   :  { %1721 = vrot.lane.b32.xlu0 %v1716_v47, %s2967_s28 }
 0x290   :  { %1719 = vrot.lane.b32.xlu0 %v1715_v20, %s2967_s28  ;;  %v1464_v20 = vmul.f32 0.0, %v1449_v37 }
 0x298   :  { %1864 = vrot.lane.b32.xlu0 %v1857_v31, %s2968_s8 }
 0x2a0   :  { %2109 = vrot.lane.b32.xlu0 %v2103_v34, %s2969_s11  ;;  %v2521_v34 = vperm.slane %v3418_v2, 3 }
 0x2a8   :  { %2246 = vrot.lane.b32.xlu0 %v2241_v40, %s2970_s12 }
 0x2b0   :  { %2389 = vrot.lane.b32.xlu0 %v2382_v45, %s2971_s15 }
 0x2b8   :  { %2383 = vrot.lane.b32.xlu0 %v2379_v52, %s2971_s15 }
 0x2df   :  { %v1383_v13 = vpop.xlane.xlu0 %1382 }
 0x2e0   :  { %v1384_v38 = vmul.f32 0.001953125, %v1383_v13 }
 0x2e2   :  { %v1385_v14 = vadd.f32 1e-05, %v1384_v38 }
 0x2e4   :  { %2961 = vrsqrt.f32 %v1385_v14  ;;  %vm1392_vm11 = vweird.f32 %v1385_v14 }
 0x2ea   :  { %v2962_v16 = vpop.eup %2961 }
 0x2eb   :  { %v1387_v17 = vmul.f32 %v2962_v16, %v1385_v14  ;;  %vm1393_vm10 = vweird.f32 %v2962_v16 }
 0x2ec   :  { %vm1394_vm12 = vmor %vm1392_vm11, %vm1393_vm10 }
 0x2ed   :  { %v1388_v18 = vmul.f32 %v2962_v16, %v1387_v17 }
 0x2ef   :  { %v1389_v19 = vmul.f32 0.5, %v1388_v18 }
 0x2f1   :  { %v1390_v21 = vsub.f32 1.5, %v1389_v19 }
 0x2f2   :  { %v1451_v8 = vpop.permute.xlu0 %1450 }
 0x2f3   :  { %v1391_v23 = vmul.f32 %v2962_v16, %v1390_v21  ;;  %v1493_v21 = vmul.f32 0.0, %v3405_v53  ;;  %v1456_v43 = vsel %vm42_vm2, %v1449_v37, %v1451_v8 }
 0x2f5   :  { %v1395_v24 = vsel %vm1394_vm12, %v2962_v16, %v1391_v23  ;;  %v1726_v23 = vpop.permute.xlu2 %1725 }
 0x2f6   :  { %v1396_v25 = vmul.f32 %v1395_v24, %v3375_v22 }
 0x2f8   :  { %1405 = vperm.xlu1 %2876, %v1396_v25   ;;  %v1397_v26 = vmul.f32 %v1396_v25, %v1370_v59 }
 0x2fa   :  { %v3426_v10 = vpop.permute.xlu0 %1721 }
 0x2fd   :  { %v1863_v36 = vpop.permute.xlu2 %1862 }
 0x300   :  { %1399 = vrot.lane.b32.xlu1 %v1397_v26, %s2969_s11 }
 0x301   :  { %2877 = vset.pattern.permute.xlu1 %v2974_v48 }
 0x308   :  { %1454 = vrot.lane.b32.xlu1 %v1447_v27, %s2966_s25  ;;  %v1720_v27 = vpop.permute.xlu0 %1719 }
 0x309   :  { %v1735_v50 = vmul.f32 0.0, %v1720_v27 }
 0x310   :  { %1723 = vrot.lane.b32.xlu1 %v1717_v28, %s2967_s28  ;;  %v1865_v42 = vpop.permute.xlu0 %1864 }
 0x311   :  { %v1868_v58 = vsel %vm497_vm4, %v1863_v36, %v1865_v42 }
 0x318   :  { %1860 = vrot.lane.b32.xlu1 %v1855_v33, %s2968_s8 }
 0x320   :  { %1858 = vrot.lane.b32.xlu1 %v1854_v35, %s2968_s8  ;;  %v1485_v35 = vsel %vm71_vm1, %v3405_v53, %v3359_v46 }
 0x36a   :  { %v1406_v57 = vpop.permute.xlu1 %1405 }
 0x36b   :  { %v1409_v11 = vmul.f32 %v1406_v57, %v3331_v41  ;;  %v1410_v13 = vmul.f32 %v1406_v57, %v3335_v49  ;;  %v1411_v38 = vmul.f32 %v1406_v57, %v3339_v51  ;;  %v1487_v41 = vsel %vm71_vm1, %v3365_v6, %v1484_v7 }
 0x36c   :  { %v1408_v24 = vmul.f32 %v1406_v57, %v3333_v44  ;;  %v1457_v6 = vsel %vm42_vm2, %v1451_v8, %v1453_v55 }
 0x372   :  { %v1400_v59 = vpop.permute.xlu1 %1399 }
 0x373   :  { %v1402_v60 = vsub.f32 %v3375_v22, %v1400_v59  ;;  %v2108_v59 = vpop.permute.xlu2 %2107 }
 0x375   :  { %1414 = vperm.xlu1 %2877, %v1402_v60  }
 0x37a   :  { %v1455_v1 = vpop.permute.xlu1 %1454 }
 0x37b   :  { %v1458_v32 = vsel %vm42_vm2, %v1453_v55, %v1455_v1  ;;  %v2251_v8 = vpop.permute.xlu2 %2250 }
 0x37d   :  { %2111 = vrot.lane.b32.xlu1 %v2104_v61, %s2969_s11  ;;  %v2110_v61 = vpop.permute.xlu0 %2109 }
 0x382   :  { %v1724_v4 = vpop.permute.xlu1 %1723 }
 0x383   :  { %v1728_v45 = vsel %vm342_vm3, %v3426_v10, %v1724_v4  ;;  %v1729_v48 = vsel %vm342_vm3, %v1724_v4, %v1726_v23 }
 0x385   :  { %2105 = vrot.lane.b32.xlu1 %v2101_v62, %s2969_s11 }
 0x38a   :  { %v3422_v5 = vpop.permute.xlu1 %1860 }
 0x38b   :  { %v1867_v60 = vsel %vm497_vm4, %v3422_v5, %v1863_v36 }
 0x38d   :  { %2248 = vrot.lane.b32.xlu1 %v2242_v63, %s2970_s12 }
 0x392   :  { %v3424_v9 = vpop.permute.xlu1 %1858 }
 0x395   :  { %2385 = vrot.lane.b32.xlu1 %v2380_v0, %s2971_s15  ;;  %v1727_v0 = vsel %vm342_vm3, %v1720_v27, %v3426_v10  ;;  %v2518_v10 = vperm.slane %v3418_v2, 0 }
 0x3e7   :  { %v1415_v14 = vpop.permute.xlu1 %1414 }
 0x3e8   :  { %v1418_v15 = vadd.f32 %v1415_v14, %v1409_v11  ;;  %v1419_v47 = vadd.f32 %v1415_v14, %v1410_v13  ;;  %v1420_v16 = vadd.f32 %v1415_v14, %v1411_v38  ;;  %v1417_v29 = vadd.f32 %v1415_v14, %v1408_v24  ;;  %v2247_v13 = vpop.permute.xlu0 %2246 }
 0x3e9   :  { %v1874_v11 = vmul.f32 0.0, %v3424_v9  ;;  %v1866_v38 = vsel %vm497_vm4, %v3424_v9, %v3422_v5  ;;  %v2245_v5 = vpop.permute.xlu2 %2244 }
 0x3ea   :  { %v3431_v17 = vmax.f32 %v1418_v15, 0.0  ;;  %v3433_v18 = vmax.f32 %v1419_v47, 0.0  ;;  %v3435_v19 = vmax.f32 %v1420_v16, 0.0  ;;  %v3453_v33 = vmax.f32 %v1417_v29, 0.0 }
 0x3eb   :  { %v2114_v16 = vsel %vm530_vm5, %v2108_v59, %v2110_v61 }
 0x3ec   :  { %v1497_v49 = vmul.f32 %v1484_v7, %v3435_v19  ;;  %v1495_v51 = vmul.f32 %v3370_v12, %v3431_v17  ;;  %v1496_v25 = vmul.f32 %v1487_v41, %v3433_v18  ;;  %v1468_v26 = vmul.f32 %v1455_v1, %v3435_v19 }
 0x3ed   :  { %v1466_v44 = vmul.f32 %v1457_v6, %v3431_v17  ;;  %v1467_v12 = vmul.f32 %v1458_v32, %v3433_v18  ;;  %v1494_v40 = vmul.f32 %v1485_v35, %v3453_v33  ;;  %v1739_v46 = vmul.f32 %v1726_v23, %v3435_v19 }
 0x3ee   :  { %v2883_v28 = vpack.i.bf16 %v1493_v21, %v1497_v49  ;;  %v2878_v30 = vpack.i.bf16 %v1496_v25, %v1495_v51  ;;  %v2893_v31 = vpack.i.bf16 %v1464_v20, %v1468_v26  ;;  %v1737_v52 = vmul.f32 %v1728_v45, %v3431_v17 }
 0x3ef   :  { %v2888_v39 = vpack.i.bf16 %v1467_v12, %v1466_v44  ;;  %v1738_v53 = vmul.f32 %v1729_v48, %v3433_v18  ;;  %v2112_v54 = vpop.permute.xlu1 %2111  ;;  %v1465_v55 = vmul.f32 %v1456_v43, %v3453_v33  ;;  %v2903_v56 = vpack.i.bf16 %v1735_v50, %v1739_v46 }
 0x3f0   :  { %2884 = vrot.lane.b32.xlu0 %v2883_v28, %s2971_s15  ;;  %2879 = vrot.lane.b32.xlu2 %v2878_v30, %s2971_s15  ;;  %v1876_v62 = vmul.f32 %v1867_v60, %v3431_v17  ;;  %v1877_v63 = vmul.f32 %v1868_v58, %v3433_v18  ;;  %v2520_v1 = vperm.slane %v3418_v2, 2  ;;  %v1736_v3 = vmul.f32 %v1727_v0, %v3453_v33  ;;  %v2390_v49 = vpop.permute.xlu0 %2389  ;;  %v2811_v58 = vld [vmem:[%s3675_s2 + $0x8] sm:$0xff] }
 0x3f1   :  { %2894 = vrot.lane.b32.xlu1 %v2893_v31, %s2972_s16  ;;  %v2898_v57 = vpack.i.bf16 %v1738_v53, %v1737_v52  ;;  %v1878_v37 = vmul.f32 %v1865_v42, %v3435_v19  ;;  %v2115_v15 = vsel %vm530_vm5, %v2110_v61, %v2112_v54  ;;  %v1875_v47 = vmul.f32 %v1866_v38, %v3453_v33  ;;  %v2388_v44 = vpop.permute.xlu2 %2387  ;;  %v1442_v38 = vld [vmem:[%s3675_s2] sm:$0xff] }
 0x3f2   :  { %v2908_v4 = vpack.i.bf16 %v1877_v63, %v1876_v62  ;;  %v2124_v20 = vmul.f32 %v2115_v15, %v3435_v19  ;;  %v2125_v21 = vmul.f32 0.0, %v2112_v54  ;;  %v2123_v23 = vmul.f32 %v2114_v16, %v3433_v18 }
 0x3f3   :  { %v2913_v14 = vpack.i.bf16 %v1874_v11, %v1878_v37  ;;  %v2264_v30 = vmul.f32 0.0, %v2251_v8  ;;  %v2260_v31 = vmul.f32 %v2245_v5, %v3453_v33  ;;  %v2252_v6 = vsel %vm375_vm6, %v2245_v5, %v2247_v13 }
 0x3f4   :  { %v2918_v51 = vpack.i.bf16 %v2124_v20, %v2123_v23  ;;  %v2261_v36 = vmul.f32 %v2252_v6, %v3431_v17  ;;  %v2403_v43 = vmul.f32 0.0, %v2390_v49  ;;  %v3553_v20 = vld [vmem:[%s3671_s3 + $0x4] ss:$8 sm:$0xf] }
 0x3f5   :  { %v2933_v35 = vpack.i.bf16 %v2260_v31, %v2264_v30 }
 0x3f7   :  { %v2106_v7 = vpop.permute.xlu1 %2105 }
 0x3f8   :  { %2889 = vrot.lane.b32.xlu0 %v2888_v39, %s2972_s16  ;;  %1505 = vrot.lane.b32.xlu2 %v1494_v40, %s2971_s15  ;;  %v2121_v41 = vmul.f32 %v2106_v7, %v3453_v33  ;;  %v2113_v9 = vsel %vm530_vm5, %v2106_v7, %v2108_v59  ;;  %v2384_v39 = vpop.permute.xlu0 %2383  ;;  %v2393_v40 = vsel %vm104_vm7, %v2388_v44, %v2390_v49 }
 0x3f9   :  { %2528 = vrot.lane.b32.xlu1 %v2521_v34, %s2972_s16  ;;  %v2122_v25 = vmul.f32 %v2113_v9, %v3431_v17  ;;  %v2399_v45 = vmul.f32 %v2384_v39, %v3453_v33  ;;  %v2402_v48 = vmul.f32 %v2393_v40, %v3435_v19  ;;  %v3526_v54 = vpop.permute.xlu2 %2524 }
 0x3fa   :  { %v2923_v24 = vpack.i.bf16 %v2121_v41, %v2125_v21 }
 0x3fb   :  { %v2943_v52 = vpack.i.bf16 %v2399_v45, %v2403_v43 }
 0x3ff   :  { %v2249_v2 = vpop.permute.xlu1 %2248 }
 0x400   :  { %1612 = vrot.lane.b32.xlu0 %v1465_v55, %s2972_s16  ;;  %2904 = vrot.lane.b32.xlu2 %v2903_v56, %s2970_s12  ;;  %v2253_v26 = vsel %vm375_vm6, %v2247_v13, %v2249_v2  ;;  %v2254_v27 = vsel %vm375_vm6, %v2249_v2, %v2251_v8 }
 0x401   :  { %2899 = vrot.lane.b32.xlu1 %v2898_v57, %s2970_s12  ;;  %v2262_v28 = vmul.f32 %v2253_v26, %v3433_v18  ;;  %v2263_v29 = vmul.f32 %v2254_v27, %v3435_v19 }
 0x403   :  { %v2928_v12 = vpack.i.bf16 %v2263_v29, %v2262_v28  ;;  %v2821_v28 = vld [vmem:[%s3675_s2 + $0x10] sm:$0xff] }
 0x407   :  { %v2386_v32 = vpop.permute.xlu1 %2385 }
 0x408   :  { %2526 = vrot.lane.b32.xlu0 %v2520_v1, %s2972_s16  ;;  %2909 = vrot.lane.b32.xlu2 %v2908_v4, %s2969_s11  ;;  %v2392_v34 = vsel %vm104_vm7, %v2386_v32, %v2388_v44  ;;  %v2391_v50 = vsel %vm104_vm7, %v2384_v39, %v2386_v32  ;;  %v1994_v44 = vperm.slane %v3553_v20, 1 }
 0x409   :  { %1747 = vrot.lane.b32.xlu1 %v1736_v3, %s2970_s12  ;;  %v2401_v42 = vmul.f32 %v2392_v34, %v3433_v18  ;;  %v2400_v53 = vmul.f32 %v2391_v50, %v3431_v17  ;;  %v1993_v50 = vperm.slane %v3553_v20, 0 }
 0x40a   :  { %v2002_v45 = vmul.f32 %v1994_v44, %v3431_v17  ;;  %v2851_v44 = vld [vmem:[%s3675_s2 + $0x38] sm:$0xff] }
 0x40b   :  { %v2938_v46 = vpack.i.bf16 %v2402_v48, %v2401_v42 }
 0x410   :  { %2914 = vrot.lane.b32.xlu0 %v2913_v14, %s2969_s11  ;;  %1886 = vrot.lane.b32.xlu2 %v1875_v47, %s2969_s11 }
 0x411   :  { %2522 = vrot.lane.b32.xlu1 %v2518_v10, %s2972_s16 }
 0x418   :  { %2919 = vrot.lane.b32.xlu0 %v2918_v51, %s2968_s8  ;;  %2133 = vrot.lane.b32.xlu2 %v2122_v25, %s2968_s8  ;;  %v1995_v25 = vperm.slane %v3553_v20, 2 }
 0x419   :  { %2924 = vrot.lane.b32.xlu1 %v2923_v24, %s2968_s8 }
 0x41a   :  { %v2003_v30 = vmul.f32 %v1995_v25, %v3433_v18 }
 0x420   :  { %2929 = vrot.lane.b32.xlu0 %v2928_v12, %s2967_s28  ;;  %2272 = vrot.lane.b32.xlu2 %v2261_v36, %s2967_s28 }
 0x421   :  { %2934 = vrot.lane.b32.xlu1 %v2933_v35, %s2967_s28 }
 0x428   :  { %2939 = vrot.lane.b32.xlu0 %v2938_v46, %s2965_s24  ;;  %2411 = vrot.lane.b32.xlu2 %v2400_v53, %s2965_s24 }
 0x429   :  { %2944 = vrot.lane.b32.xlu1 %v2943_v52, %s2965_s24  ;;  %v1996_v52 = vperm.slane %v3553_v20, 3 }
 0x44a   :  { %v2880_v55 = vpop.permute.xlu2 %2879 }
 0x44b   :  { %v2882_v56 = vunpack.i.h.bf16 %v2880_v55  ;;  %v2881_v57 = vunpack.i.l.bf16 %v2880_v55 }
 0x44d   :  { %v1515_v59 = vsel %vm104_vm7, %v2881_v57, %v2882_v56 }
 0x44e   :  { %1580 = vmatpush.msrb.mxu2 %v1515_v59 }
 0x44f   :  { %2814 = vmatmul.msk.f32.vlgmr.msrb.gmra.mxu2 %vm1521_vm13, %v2811_v58 }
 0x452   :  { %v1506_v60 = vpop.permute.xlu2 %1505 }
 0x453   :  { %v1514_v61 = vsel %vm104_vm7, %v1506_v60, %v2881_v57 }
 0x454   :  { %1560 = vmatpush.msrb.mxu1 %v1514_v61 }
 0x455   :  { %2813 = vmatmul.msk.f32.vlgmr.msrb.gmra.mxu1 %vm1521_vm13, %v2811_v58 }
 0x45a   :  { %v2905_v7 = vpop.permute.xlu2 %2904 }
 0x45b   :  { %v2906_v49 = vunpack.i.l.bf16 %v2905_v7  ;;  %v2907_v31 = vunpack.i.h.bf16 %v2905_v7 }
 0x462   :  { %v2885_v62 = vpop.permute.xlu0 %2884  ;;  %v3548_v47 = vpop.permute.xlu2 %2909 }
 0x463   :  { %v2887_v63 = vunpack.i.h.bf16 %v2885_v62  ;;  %v2886_v0 = vunpack.i.l.bf16 %v2885_v62  ;;  %v2895_v1 = vpop.permute.xlu1 %2894  ;;  %v2912_v21 = vunpack.i.h.bf16 %v3548_v47  ;;  %v2911_v41 = vunpack.i.l.bf16 %v3548_v47 }
 0x464   :  { %v2896_v37 = vunpack.i.l.bf16 %v2895_v1  ;;  %v2897_v16 = vunpack.i.h.bf16 %v2895_v1  ;;  %v2004_v1 = vmul.f32 %v1996_v52, %v3435_v19 }
 0x465   :  { %v1513_v3 = vsel %vm104_vm7, %v2887_v63, %v1506_v60  ;;  %v1516_v4 = vsel %vm104_vm7, %v2882_v56, %v2886_v0  ;;  %v1896_v29 = vsel %vm530_vm5, %v2911_v41, %v2912_v21  ;;  %v2001_v63 = vmul.f32 %v1993_v50, %v3453_v33 }
 0x466   :  { %1540 = vmatpush.msrb.mxu0 %v1513_v3  ;;  %1600 = vmatpush.msrb.mxu3 %v1516_v4 }
 0x467   :  { %2812 = vmatmul.msk.f32.vlgmr.msrb.gmra.mxu0 %vm1521_vm13, %v2811_v58  ;;  %2815 = vmatmul.msk.f32.vlgmr.msrb.gmra.mxu3 %vm1521_vm13, %v2811_v58 }
 0x46a   :  { %v2890_v8 = vpop.permute.xlu0 %2889  ;;  %v1887_v6 = vpop.permute.xlu2 %1886 }
 0x46b   :  { %v2892_v11 = vunpack.i.h.bf16 %v2890_v8  ;;  %v2891_v13 = vunpack.i.l.bf16 %v2890_v8  ;;  %v3539_v10 = vpop.permute.xlu1 %2528  ;;  %v1895_v43 = vsel %vm530_vm5, %v1887_v6, %v2911_v41 }
 0x46c   :  { %v2542_v57 = vmul.f32 0.0, %v3539_v10 }
 0x46d   :  { %v1622_v14 = vsel %vm224_vm8, %v2891_v13, %v2892_v11  ;;  %v1623_v15 = vsel %vm224_vm8, %v2892_v11, %v2896_v37 }
 0x46e   :  { %1686 = vmatpush.msra.mxu2 %v1622_v14  ;;  %1706 = vmatpush.msra.mxu3 %v1623_v15 }
 0x46f   :  { %2818 = vmatmul.msk.f32.vlgmr.msra.gmra.mxu2 %vm1521_vm13, %v1442_v38  ;;  %2819 = vmatmul.msk.f32.vlgmr.msra.gmra.mxu3 %vm1521_vm13, %v1442_v38 }
 0x472   :  { %v1613_v2 = vpop.permute.xlu0 %1612  ;;  %v2134_v3 = vpop.permute.xlu2 %2133 }
 0x473   :  { %v1620_v5 = vsel %vm224_vm8, %v2897_v16, %v1613_v2  ;;  %v1621_v9 = vsel %vm224_vm8, %v1613_v2, %v2891_v13  ;;  %v2900_v23 = vpop.permute.xlu1 %2899 }
 0x474   :  { %v2902_v51 = vunpack.i.h.bf16 %v2900_v23  ;;  %v2901_v24 = vunpack.i.l.bf16 %v2900_v23  ;;  %1646 = vmatpush.msra.mxu0 %v1620_v5  ;;  %1666 = vmatpush.msra.mxu1 %v1621_v9 }
 0x475   :  { %2817 = vmatmul.msk.f32.vlgmr.msra.gmra.mxu1 %vm1521_vm13, %v1442_v38  ;;  %2816 = vmatmul.msk.f32.vlgmr.msra.gmra.mxu0 %vm1521_vm13, %v1442_v38  ;;  %v2839_v38 = vld [vmem:[%s3675_s2 + $0x28] sm:$0xff] }
 0x476   :  { %v1757_v26 = vsel %vm375_vm6, %v2901_v24, %v2902_v51  ;;  %v1758_v27 = vsel %vm375_vm6, %v2902_v51, %v2906_v49  ;;  %v2845_v49 = vld [vmem:[%s3675_s2 + $0x30] sm:$0xff] }
 0x477   :  { %1821 = vmatpush.msrb.mxu2 %v1757_v26  ;;  %1841 = vmatpush.msrb.mxu3 %v1758_v27 }
 0x478   :  { %2825 = vmatmul.msk.f32.vlgmr.msrb.gmra.mxu3 %vm1521_vm13, %v2821_v28  ;;  %2824 = vmatmul.msk.f32.vlgmr.msrb.gmra.mxu2 %vm1521_vm13, %v2821_v28 }
 0x479   :  { %1960 = vmatpush.msra.mxu2 %v1896_v29 }
 0x47a   :  { %v2527_v32 = vpop.permute.xlu0 %2526  ;;  %v2273_v14 = vpop.permute.xlu2 %2272 }
 0x47b   :  { %2063 = vmatpush.msrb.mxu2 %v2003_v30  ;;  %v2531_v12 = vsel %vm224_vm8, %v3526_v54, %v2527_v32  ;;  %v2532_v34 = vsel %vm224_vm8, %v2527_v32, %v3539_v10  ;;  %v1748_v35 = vpop.permute.xlu1 %1747 }
 0x47c   :  { %v2540_v36 = vmul.f32 %v2531_v12, %v3433_v18  ;;  %v2541_v39 = vmul.f32 %v2532_v34, %v3435_v19  ;;  %v1755_v40 = vsel %vm375_vm6, %v2907_v31, %v1748_v35  ;;  %v1756_v42 = vsel %vm375_vm6, %v1748_v35, %v2901_v24  ;;  %v2827_v18 = vld [vmem:[%s3675_s2 + $0x18] sm:$0xff] }
 0x47d   :  { %1781 = vmatpush.msrb.mxu0 %v1755_v40  ;;  %1801 = vmatpush.msrb.mxu1 %v1756_v42 }
 0x47e   :  { %v2948_v48 = vpack.i.bf16 %v2541_v39, %v2540_v36  ;;  %2822 = vmatmul.msk.f32.vlgmr.msrb.gmra.mxu0 %vm1521_vm13, %v2821_v28  ;;  %2823 = vmatmul.msk.f32.vlgmr.msrb.gmra.mxu1 %vm1521_vm13, %v2821_v28  ;;  %v2857_v39 = vld [vmem:[%s3675_s2 + $0x40] sm:$0xff] }
 0x47f   :  { %1940 = vmatpush.msra.mxu1 %v1895_v43 }
 0x480   :  { %2949 = vrot.lane.b32.xlu0 %v2948_v48, %s2966_s25  ;;  %2830 = vmatmul.msk.f32.vlgmr.msra.gmra.mxu2 %vm1521_vm13, %v2827_v18 }
 0x481   :  { %2043 = vmatpush.msrb.mxu1 %v2002_v45 }
 0x482   :  { %v2915_v46 = vpop.permute.xlu0 %2914  ;;  %v2412_v27 = vpop.permute.xlu2 %2411 }
 0x483   :  { %v2917_v53 = vunpack.i.h.bf16 %v2915_v46  ;;  %v2916_v55 = vunpack.i.l.bf16 %v2915_v46  ;;  %v2523_v56 = vpop.permute.xlu1 %2522 }
 0x484   :  { %v2538_v58 = vmul.f32 %v2523_v56, %v3453_v33  ;;  %v2530_v59 = vsel %vm224_vm8, %v2523_v56, %v3526_v54  ;;  %v2833_v54 = vld [vmem:[%s3675_s2 + $0x20] sm:$0xff] }
 0x485   :  { %v2539_v60 = vmul.f32 %v2530_v59, %v3431_v17  ;;  %v1894_v61 = vsel %vm530_vm5, %v2917_v53, %v1887_v6  ;;  %v1897_v62 = vsel %vm530_vm5, %v2912_v21, %v2916_v55 }
 0x486   :  { %v2953_v0 = vpack.i.bf16 %v2538_v58, %v2542_v57  ;;  %1920 = vmatpush.msra.mxu0 %v1894_v61  ;;  %1980 = vmatpush.msra.mxu3 %v1897_v62 }
 0x487   :  { %2550 = vrot.lane.b32.xlu2 %v2539_v60, %s2966_s25  ;;  %2828 = vmatmul.msk.f32.vlgmr.msra.gmra.mxu0 %vm1521_vm13, %v2827_v18 }
 0x488   :  { %2023 = vmatpush.msrb.mxu0 %v2001_v63  ;;  %2954 = vrot.lane.b32.xlu1 %v2953_v0, %s2966_s25 }
 0x489   :  { %2083 = vmatpush.msrb.mxu3 %v2004_v1  ;;  %2829 = vmatmul.msk.f32.vlgmr.msra.gmra.mxu1 %vm1521_vm13, %v2827_v18 }
 0x48a   :  { %v2920_v17 = vpop.permute.xlu0 %2919  ;;  %2831 = vmatmul.msk.f32.vlgmr.msra.gmra.mxu3 %vm1521_vm13, %v2827_v18  ;;  %2836 = vmatmul.msk.f32.vlgmr.msrb.gmra.mxu2 %vm1521_vm13, %v2833_v54 }
 0x48b   :  { %v2925_v19 = vpop.permute.xlu1 %2924  ;;  %v2922_v33 = vunpack.i.h.bf16 %v2920_v17  ;;  %v2921_v4 = vunpack.i.l.bf16 %v2920_v17 }
 0x48c   :  { %v2927_v7 = vunpack.i.h.bf16 %v2925_v19  ;;  %v2926_v8 = vunpack.i.l.bf16 %v2925_v19 }
 0x48d   :  { %v2142_v37 = vsel %vm497_vm4, %v2134_v3, %v2921_v4  ;;  %v2143_v11 = vsel %vm497_vm4, %v2921_v4, %v2922_v33 }
 0x48e   :  { %v2141_v13 = vsel %vm497_vm4, %v2927_v7, %v2134_v3  ;;  %2187 = vmatpush.msra.mxu1 %v2142_v37  ;;  %2207 = vmatpush.msra.mxu2 %v2143_v11  ;;  %v2144_v10 = vsel %vm497_vm4, %v2922_v33, %v2926_v8 }
 0x48f   :  { %2167 = vmatpush.msra.mxu0 %v2141_v13  ;;  %2227 = vmatpush.msra.mxu3 %v2144_v10 }
 0x490   :  { %2834 = vmatmul.msk.f32.vlgmr.msrb.gmra.mxu0 %vm1521_vm13, %v2833_v54 }
 0x491   :  { %2835 = vmatmul.msk.f32.vlgmr.msrb.gmra.mxu1 %vm1521_vm13, %v2833_v54 }
 0x492   :  { %v2930_v15 = vpop.permute.xlu0 %2929  ;;  %2837 = vmatmul.msk.f32.vlgmr.msrb.gmra.mxu3 %vm1521_vm13, %v2833_v54  ;;  %2842 = vmatmul.msk.f32.vlgmr.msra.gmra.mxu2 %vm1521_vm13, %v2839_v38 }
 0x493   :  { %v2932_v47 = vunpack.i.h.bf16 %v2930_v15  ;;  %v2931_v16 = vunpack.i.l.bf16 %v2930_v15  ;;  %v2935_v20 = vpop.permute.xlu1 %2934 }
 0x494   :  { %v2937_v2 = vunpack.i.h.bf16 %v2935_v20  ;;  %v2936_v21 = vunpack.i.l.bf16 %v2935_v20 }
 0x495   :  { %v2281_v41 = vsel %vm342_vm3, %v2273_v14, %v2931_v16  ;;  %v2282_v5 = vsel %vm342_vm3, %v2931_v16, %v2932_v47 }
 0x496   :  { %v2280_v9 = vsel %vm342_vm3, %v2937_v2, %v2273_v14  ;;  %2326 = vmatpush.msrb.mxu1 %v2281_v41  ;;  %2346 = vmatpush.msrb.mxu2 %v2282_v5  ;;  %v2283_v23 = vsel %vm342_vm3, %v2932_v47, %v2936_v21 }
 0x497   :  { %2306 = vmatpush.msrb.mxu0 %v2280_v9  ;;  %2366 = vmatpush.msrb.mxu3 %v2283_v23 }
 0x498   :  { %2840 = vmatmul.msk.f32.vlgmr.msra.gmra.mxu0 %vm1521_vm13, %v2839_v38 }
 0x499   :  { %2841 = vmatmul.msk.f32.vlgmr.msra.gmra.mxu1 %vm1521_vm13, %v2839_v38 }
 0x49a   :  { %v2940_v51 = vpop.permute.xlu0 %2939  ;;  %2843 = vmatmul.msk.f32.vlgmr.msra.gmra.mxu3 %vm1521_vm13, %v2839_v38  ;;  %2848 = vmatmul.msk.f32.vlgmr.msrb.gmra.mxu2 %vm1521_vm13, %v2845_v49 }
 0x49b   :  { %v2945_v24 = vpop.permute.xlu1 %2944  ;;  %v2942_v25 = vunpack.i.h.bf16 %v2940_v51  ;;  %v2941_v26 = vunpack.i.l.bf16 %v2940_v51 }
 0x49c   :  { %v2947_v28 = vunpack.i.h.bf16 %v2945_v24  ;;  %v2946_v29 = vunpack.i.l.bf16 %v2945_v24 }
 0x49d   :  { %v2420_v30 = vsel %vm71_vm1, %v2412_v27, %v2941_v26  ;;  %v2421_v31 = vsel %vm71_vm1, %v2941_v26, %v2942_v25 }
 0x49e   :  { %v2419_v6 = vsel %vm71_vm1, %v2947_v28, %v2412_v27  ;;  %2465 = vmatpush.msra.mxu1 %v2420_v30  ;;  %2485 = vmatpush.msra.mxu2 %v2421_v31  ;;  %v2422_v32 = vsel %vm71_vm1, %v2942_v25, %v2946_v29 }
 0x49f   :  { %2445 = vmatpush.msra.mxu0 %v2419_v6  ;;  %2505 = vmatpush.msra.mxu3 %v2422_v32 }
 0x4a0   :  { %2846 = vmatmul.msk.f32.vlgmr.msrb.gmra.mxu0 %vm1521_vm13, %v2845_v49 }
 0x4a1   :  { %2847 = vmatmul.msk.f32.vlgmr.msrb.gmra.mxu1 %vm1521_vm13, %v2845_v49 }
 0x4a2   :  { %2849 = vmatmul.msk.f32.vlgmr.msrb.gmra.mxu3 %vm1521_vm13, %v2845_v49  ;;  %2854 = vmatmul.msk.f32.vlgmr.msra.gmra.mxu2 %vm1521_vm13, %v2851_v44 }
 0x4a8   :  { %2852 = vmatmul.msk.f32.vlgmr.msra.gmra.mxu0 %vm1521_vm13, %v2851_v44 }
 0x4a9   :  { %2853 = vmatmul.msk.f32.vlgmr.msra.gmra.mxu1 %vm1521_vm13, %v2851_v44 }
 0x4aa   :  { %2855 = vmatmul.msk.f32.vlgmr.msra.gmra.mxu3 %vm1521_vm13, %v2851_v44 }
 0x4d2   :  { %v1562_v46 = vpop.f32.mrf.mxu1  ;;  %v1582_v53 = vpop.f32.mrf.mxu2 }
 0x4e1   :  { %v2551_v36 = vpop.permute.xlu2 %2550 }
 0x4e4   :  { %v1542_v52 = vpop.f32.mrf.mxu0 }
 0x4ea   :  { %v1602_v55 = vpop.f32.mrf.mxu3 }
 0x4f2   :  { %v2950_v12 = vpop.permute.xlu0 %2949  ;;  %v1668_v56 = vpop.f32.mrf.mxu1 }
 0x4f3   :  { %v2952_v34 = vunpack.i.h.bf16 %v2950_v12  ;;  %v2951_v35 = vunpack.i.l.bf16 %v2950_v12  ;;  %v1648_v57 = vpop.f32.mrf.mxu0  ;;  %v1688_v58 = vpop.f32.mrf.mxu2  ;;  %v1669_v13 = vadd.f32 %v1668_v56, %v1562_v46 }
 0x4f4   :  { %v1708_v59 = vpop.f32.mrf.mxu3  ;;  %v1649_v11 = vadd.f32 %v1648_v57, %v1542_v52  ;;  %v1689_v38 = vadd.f32 %v1688_v58, %v1582_v53 }
 0x4f5   :  { %v2559_v40 = vsel %vm42_vm2, %v2551_v36, %v2951_v35  ;;  %v2560_v42 = vsel %vm42_vm2, %v2951_v35, %v2952_v34  ;;  %v1709_v16 = vadd.f32 %v1708_v59, %v1602_v55 }
 0x4f6   :  { %2604 = vmatpush.msrb.mxu1 %v2559_v40  ;;  %2624 = vmatpush.msrb.mxu2 %v2560_v42 }
 0x4f7   :  { %2859 = vmatmul.msk.f32.vlgmr.msrb.gmra.mxu1 %vm1521_vm13, %v2857_v39  ;;  %2860 = vmatmul.msk.f32.vlgmr.msrb.gmra.mxu2 %vm1521_vm13, %v2857_v39 }
 0x4fa   :  { %v2955_v43 = vpop.permute.xlu1 %2954 }
 0x4fb   :  { %v2957_v45 = vunpack.i.h.bf16 %v2955_v43  ;;  %v2956_v48 = vunpack.i.l.bf16 %v2955_v43  ;;  %v1803_v60 = vpop.f32.mrf.mxu1  ;;  %v1783_v61 = vpop.f32.mrf.mxu0 }
 0x4fc   :  { %v1823_v62 = vpop.f32.mrf.mxu2  ;;  %v1843_v63 = vpop.f32.mrf.mxu3  ;;  %v1846_v14 = vadd.f32 %v1783_v61, %v1649_v11  ;;  %v1847_v15 = vadd.f32 %v1803_v60, %v1669_v13 }
 0x4fd   :  { %v2558_v18 = vsel %vm42_vm2, %v2957_v45, %v2551_v36  ;;  %v2561_v50 = vsel %vm42_vm2, %v2952_v34, %v2956_v48  ;;  %v1848_v2 = vadd.f32 %v1823_v62, %v1689_v38  ;;  %v1849_v9 = vadd.f32 %v1843_v63, %v1709_v16 }
 0x4fe   :  { %2584 = vmatpush.msrb.mxu0 %v2558_v18  ;;  %2644 = vmatpush.msrb.mxu3 %v2561_v50 }
 0x4ff   :  { %2858 = vmatmul.msk.f32.vlgmr.msrb.gmra.mxu0 %vm1521_vm13, %v2857_v39  ;;  %2861 = vmatmul.msk.f32.vlgmr.msrb.gmra.mxu3 %vm1521_vm13, %v2857_v39 }
 0x504   :  { %v1922_v1 = vpop.f32.mrf.mxu0  ;;  %v1962_v54 = vpop.f32.mrf.mxu2 }
 0x505   :  { %v1985_v21 = vadd.f32 %v1922_v1, %v1846_v14  ;;  %v1987_v23 = vadd.f32 %v1962_v54, %v1848_v2 }
 0x506   :  { %v1942_v0 = vpop.f32.mrf.mxu1 }
 0x507   :  { %v1986_v41 = vadd.f32 %v1942_v0, %v1847_v15 }
 0x50d   :  { %v1982_v3 = vpop.f32.mrf.mxu3  ;;  %v2025_v19 = vpop.f32.mrf.mxu0 }
 0x50e   :  { %v2045_v17 = vpop.f32.mrf.mxu1  ;;  %v2065_v33 = vpop.f32.mrf.mxu2  ;;  %v2088_v49 = vadd.f32 %v2025_v19, %v1985_v21  ;;  %v1988_v25 = vadd.f32 %v1982_v3, %v1849_v9 }
 0x50f   :  { %v2089_v51 = vadd.f32 %v2045_v17, %v1986_v41  ;;  %v2090_v27 = vadd.f32 %v2065_v33, %v1987_v23  ;;  %v2976_v41 = vmov 3  }
 0x510   :  { %2960 = vset.pattern.permute.xlu0 %v2976_v41 }
 0x515   :  { %v2085_v4 = vpop.f32.mrf.mxu3  ;;  %v2169_v8 = vpop.f32.mrf.mxu0 }
 0x516   :  { %v2189_v7 = vpop.f32.mrf.mxu1  ;;  %v2209_v37 = vpop.f32.mrf.mxu2  ;;  %v2232_v28 = vadd.f32 %v2169_v8, %v2088_v49  ;;  %v2091_v31 = vadd.f32 %v2085_v4, %v1988_v25  ;;  %v2975_v8 = vmov 2  }
 0x517   :  { %v2233_v29 = vadd.f32 %v2189_v7, %v2089_v51  ;;  %v2234_v32 = vadd.f32 %v2209_v37, %v2090_v27  ;;  %2958 = vset.pattern.permute.xlu2 %v2975_v8 }
 0x51d   :  { %v2229_v10 = vpop.f32.mrf.mxu3  ;;  %v2308_v20 = vpop.f32.mrf.mxu0 }
 0x51e   :  { %v2328_v47 = vpop.f32.mrf.mxu1  ;;  %v2348_v5 = vpop.f32.mrf.mxu2  ;;  %v2371_v44 = vadd.f32 %v2308_v20, %v2232_v28  ;;  %v2235_v34 = vadd.f32 %v2229_v10, %v2091_v31 }
 0x51f   :  { %v2372_v12 = vadd.f32 %v2328_v47, %v2233_v29  ;;  %v2373_v39 = vadd.f32 %v2348_v5, %v2234_v32 }
 0x525   :  { %v2368_v24 = vpop.f32.mrf.mxu3  ;;  %v2447_v30 = vpop.f32.mrf.mxu0 }
 0x526   :  { %v2467_v26 = vpop.f32.mrf.mxu1  ;;  %v2487_v6 = vpop.f32.mrf.mxu2  ;;  %v2510_v40 = vadd.f32 %v2447_v30, %v2371_v44  ;;  %v2374_v45 = vadd.f32 %v2368_v24, %v2235_v34 }
 0x527   :  { %v2511_v42 = vadd.f32 %v2467_v26, %v2372_v12  ;;  %v2512_v46 = vadd.f32 %v2487_v6, %v2373_v39 }
 0x52d   :  { %v2507_v35 = vpop.f32.mrf.mxu3 }
 0x52e   :  { %v2513_v53 = vadd.f32 %v2507_v35, %v2374_v45 }
 0x574   :  { %v2606_v36 = vpop.f32.mrf.mxu1 }
 0x575   :  { %v2650_v48 = vadd.f32 %v2606_v36, %v2511_v42 }
 0x57a   :  { %v2626_v50 = vpop.f32.mrf.mxu2 }
 0x57b   :  { %v2651_v55 = vadd.f32 %v2626_v50, %v2512_v46 }
 0x57c   :  { %v2586_v43 = vpop.f32.mrf.mxu0 }
 0x57d   :  { %v2649_v18 = vadd.f32 %v2586_v43, %v2510_v40 }
 0x57f   :  { %v2653_v52 = vadd.f32 %v2650_v48, %v2649_v18 }
 0x581   :  { %v2654_v58 = vadd.f32 %v2653_v52, %v2651_v55 }
 0x582   :  { %v2646_v56 = vpop.f32.mrf.mxu3 }
 0x583   :  { %v2652_v57 = vadd.f32 %v2646_v56, %v2513_v53 }
 0x585   :  { %v2655_v59 = vadd.f32 %v2654_v58, %v2652_v57 }
 0x587   :  { %2656 = vadd.xlane.f32.xlu0 %v2655_v59 }
 0x5fa   :  { %v2657_v60 = vpop.xlane.xlu0 %2656 }
 0x5fb   :  { %v2658_v61 = vmul.f32 0.001953125, %v2657_v60 }
 0x5fd   :  { %v2659_v62 = vsub.f32 %v2649_v18, %v2658_v61  ;;  %v2660_v63 = vsub.f32 %v2650_v48, %v2658_v61  ;;  %v2661_v0 = vsub.f32 %v2651_v55, %v2658_v61  ;;  %v2662_v1 = vsub.f32 %v2652_v57, %v2658_v61 }
 0x5ff   :  { %v2663_v54 = vmul.f32 %v2659_v62, %v2659_v62  ;;  %v2664_v3 = vmul.f32 %v2660_v63, %v2660_v63  ;;  %v2665_v17 = vmul.f32 %v2661_v0, %v2661_v0  ;;  %v2666_v33 = vmul.f32 %v2662_v1, %v2662_v1 }
 0x601   :  { %v2667_v19 = vadd.f32 %v2664_v3, %v2663_v54 }
 0x603   :  { %v2668_v4 = vadd.f32 %v2667_v19, %v2665_v17 }
 0x605   :  { %v2669_v7 = vadd.f32 %v2668_v4, %v2666_v33 }
 0x607   :  { %2670 = vadd.xlane.f32.xlu1 %v2669_v7 }
 0x67a   :  { %v2671_v37 = vpop.xlane.xlu1 %2670 }
 0x67b   :  { %v2672_v11 = vmul.f32 0.001953125, %v2671_v37 }
 0x67d   :  { %v2673_v13 = vadd.f32 1e-05, %v2672_v11 }
 0x67f   :  { %2963 = vrsqrt.f32 %v2673_v13  ;;  %vm2680_vm15 = vweird.f32 %v2673_v13 }
 0x685   :  { %v2964_v10 = vpop.eup %2963 }
 0x686   :  { %v2675_v38 = vmul.f32 %v2964_v10, %v2673_v13  ;;  %vm2681_vm14 = vweird.f32 %v2964_v10 }
 0x687   :  { %vm2682_vm0 = vmor %vm2680_vm15, %vm2681_vm14 }
 0x688   :  { %v2676_v14 = vmul.f32 %v2964_v10, %v2675_v38 }
 0x68a   :  { %v2677_v15 = vmul.f32 0.5, %v2676_v14 }
 0x68c   :  { %v2678_v47 = vsub.f32 1.5, %v2677_v15 }
 0x68e   :  { %v2679_v16 = vmul.f32 %v2964_v10, %v2678_v47 }
 0x690   :  { %v2683_v20 = vsel %vm2682_vm0, %v2964_v10, %v2679_v16 }
 0x691   :  { %v2684_v2 = vmul.f32 %v2683_v20, %v3375_v22 }
 0x693   :  { %v2685_v21 = vmul.f32 %v2684_v2, %v2658_v61 }
 0x695   :  { %2687 = vrot.lane.b32.xlu2 %v2685_v21, %s2969_s11 }
 0x69d   :  { %2693 = vperm.xlu2 %2958, %v2684_v2  }
 0x6a5   :  { %2959 = vset.pattern.permute.xlu2 %v2976_v41 }
 0x6ef   :  { %v2688_v5 = vpop.permute.xlu2 %2687 }
 0x6f0   :  { %v2690_v9 = vsub.f32 %v3375_v22, %v2688_v5 }
 0x6f2   :  { %2702 = vperm.xlu2 %2959, %v2690_v9  }
 0x6f7   :  { %v2694_v23 = vpop.permute.xlu2 %2693 }
 0x6f8   :  { %v2696_v49 = vmul.f32 %v2694_v23, %v2649_v18  ;;  %v2697_v51 = vmul.f32 %v2694_v23, %v2650_v48  ;;  %v2698_v24 = vmul.f32 %v2694_v23, %v2651_v55  ;;  %v2699_v25 = vmul.f32 %v2694_v23, %v2652_v57 }
 0x74c   :  { %v2703_v26 = vpop.permute.xlu2 %2702 }
 0x74d   :  { %v2705_v27 = vadd.f32 %v2703_v26, %v2696_v49  ;;  %v2706_v28 = vadd.f32 %v2703_v26, %v2697_v51  ;;  %v2707_v29 = vadd.f32 %v2703_v26, %v2698_v24  ;;  %v2708_v30 = vadd.f32 %v2703_v26, %v2699_v25 }
 0x74f   :  { %v2709_v31 = vmax.f32 %v2705_v27, 0.0  ;;  %v2710_v6 = vmax.f32 %v2706_v28, 0.0  ;;  %v2711_v32 = vmax.f32 %v2707_v29, 0.0  ;;  %v2712_v44 = vmax.f32 %v2708_v30, 0.0 }
 0x751   :  { %2713 = vst [vmem:[%s3676_s5] sm:$0xff] %v2709_v31 }
 0x752   :  { %2714 = vst [vmem:[%s3676_s5 + $0x8] sm:$0xff] %v2710_v6 }
 0x753   :  { %2862 = vst [vmem:[%s3676_s5 + $0x10] sm:$0xff] %v2711_v32 }
 0x754   :  { %2863 = vst [vmem:[%s3676_s5 + $0x18] sm:$0xff] %v2712_v44 }

</bundles_post_ra>
